<compile_context>
chip_gen: v5e
topology: v5e:2x2
jax: 0.10.0
libtpu: 0.0.40
codegen_flags: <defaults>
</compile_context>

<pallas_src>
import functools

import jax
import jax.numpy as jnp
from jax.experimental import pallas as pl
from jax.experimental.pallas import tpu as pltpu

_LANE = 128        # lane width: last-dim alignment target
_SUBLANE = 8       # sublane width: batch-tile alignment target
_SPLIT_MIN = 256   # below this many rows, don't bother splitting into >=2 tiles
_NEG_BIG = -1e30   # bias for padded output columns -> exp underflows to 0
_VMEM_LIMIT = 48 * 1024 * 1024   # safe on v5e/v6e (128 MiB) and v7x (64 MiB)


def _round_up(n, m):
    return (n + m - 1) // m * m


def _choose_tile(batch, batch_tile):
    """Pick (bt, Bp): batch-tile rows and padded batch size.

    Tiny batches -> a single tile (no padding beyond the sublane).
    Larger batches -> at least 2 roughly-equal tiles so the 'parallel' grid
    axis can shard across both v7x TensorCores, with bt chosen relative to the
    batch so padded-row waste stays small even at batch_tile=2048.
    """
    b8 = _round_up(max(batch, 1), _SUBLANE)
    if b8 <= _SPLIT_MIN and b8 <= batch_tile:
        return b8, b8
    n_tiles = max(2, pl.cdiv(b8, batch_tile))
    bt = min(_round_up(pl.cdiv(b8, n_tiles), _SUBLANE), batch_tile)
    return bt, _round_up(b8, bt)


def _mlp_kernel(x_ref, w1_ref, b1_ref, w2_ref, b2_ref, w3_ref, b3_ref,
                w4_ref, b4_ref, o_ref):
    # x arrives as f32 (narrow K); cast to bf16 in-kernel (free VPU work) so
    # all four matmuls run bf16 operands with f32 accumulation on the MXU.
    x = x_ref[...].astype(jnp.bfloat16)

    h = jnp.dot(x, w1_ref[...], preferred_element_type=jnp.float32) + b1_ref[...]
    h = jnp.maximum(h, 0.0)

    h = jnp.dot(h.astype(jnp.bfloat16), w2_ref[...],
                preferred_element_type=jnp.float32) + b2_ref[...]
    h = jnp.maximum(h, 0.0)

    h = jnp.dot(h.astype(jnp.bfloat16), w3_ref[...],
                preferred_element_type=jnp.float32) + b3_ref[...]
    h = jnp.maximum(h, 0.0)

    logits = jnp.dot(h.astype(jnp.bfloat16), w4_ref[...],
                     preferred_element_type=jnp.float32) + b4_ref[...]

    # softmax over dim=1 (feature / lane axis).  Padded columns carry a -1e30
    # bias, so exp() underflows to exactly 0 and they do not perturb the
    # normalizer.  Exact divide (not approx reciprocal) so rows sum to 1.
    m = jnp.max(logits, axis=-1, keepdims=True)
    e = jnp.exp(logits - m)
    denom = jnp.sum(e, axis=-1, keepdims=True)
    o_ref[...] = (e / denom).astype(o_ref.dtype)


def prepare_params(params):
    """One-time weight padding / bf16 casting, hoisted out of the hot path.

    Returns (prep_dict, output_dim).  `prep_dict` contains only arrays and can
    be passed straight into the jitted forward.
    """
    w1, b1 = params["w1"], params["b1"]
    w2, b2 = params["w2"], params["b2"]
    w3, b3 = params["w3"], params["b3"]
    w4, b4 = params["w4"], params["b4"]
    h1, h2, h3 = w1.shape[1], w2.shape[1], w3.shape[1]   # 512, 512, 64
    output_dim = w4.shape[1]
    k3 = _round_up(h3, _LANE)          # layer-3 width / last matmul K
    n4 = _round_up(output_dim, _LANE)  # output width (lane-dense stores)

    prep = {
        "w1": w1.astype(jnp.bfloat16),                                   # (in, 512)
        "b1": b1.reshape(1, h1).astype(jnp.float32),
        "w2": w2.astype(jnp.bfloat16),                                   # (512, 512)
        "b2": b2.reshape(1, h2).astype(jnp.float32),
        "w3": jnp.zeros((h2, k3), jnp.bfloat16).at[:, :h3].set(
            w3.astype(jnp.bfloat16)),                                    # (512, 128)
        "b3": jnp.zeros((1, k3), jnp.float32).at[:, :h3].set(
            b3.reshape(1, h3).astype(jnp.float32)),
        "w4": jnp.zeros((k3, n4), jnp.bfloat16).at[:h3, :output_dim].set(
            w4.astype(jnp.bfloat16)),                                    # (128, 128)
        "b4": jnp.full((1, n4), _NEG_BIG, jnp.float32).at[:, :output_dim].set(
            b4.reshape(1, output_dim).astype(jnp.float32)),
    }
    return prep, output_dim


@functools.partial(jax.jit, static_argnames=("output_dim", "batch_tile"))
def mlp_forward(x, prep, output_dim, batch_tile=2048):
    """x: (B, input_dim) float32.  prep: dict from prepare_params()."""
    B, input_dim = x.shape
    n4 = prep["w4"].shape[1]

    bt, Bp = _choose_tile(B, batch_tile)
    grid = (Bp // bt,)

    # Only batch-row padding (and only when the batch is ragged); x stays f32
    # and lane-narrow -- the kernel casts it to bf16 itself.
    if Bp != B:
        x = jnp.pad(x, ((0, Bp - B), (0, 0)))

    # Weights/biases: full-array blocks, constant index_map -> resident in VMEM
    # across the batch grid (no re-DMA per step).
    # TODO(synk): pipeline_mode=pl.Buffered(1) on these would save ~0.8 MiB of
    # double-buffered weight VMEM on v7x; skipped since we are far from the limit.
    def rep(arr):
        zeros = (0,) * arr.ndim
        return pl.BlockSpec(arr.shape, lambda i, _z=zeros: _z)

    out = pl.pallas_call(
        _mlp_kernel,
        out_shape=jax.ShapeDtypeStruct((Bp, n4), jnp.float32),
        grid_spec=pltpu.PrefetchScalarGridSpec(
            num_scalar_prefetch=0,
            grid=grid,
            in_specs=[
                # (bt, input_dim): last dim == full array dim, so legal even
                # though input_dim < 128.
                pl.BlockSpec((bt, input_dim), lambda i: (i, 0)),
                rep(prep["w1"]), rep(prep["b1"]),
                rep(prep["w2"]), rep(prep["b2"]),
                rep(prep["w3"]), rep(prep["b3"]),
                rep(prep["w4"]), rep(prep["b4"]),
            ],
            out_specs=pl.BlockSpec((bt, n4), lambda i: (i, 0)),
        ),
        compiler_params=pltpu.CompilerParams(
            dimension_semantics=("parallel",),     # shards tiles across TCs on v7x
            vmem_limit_bytes=_VMEM_LIMIT,          # bt=2048 fused body fits single-pass
        ),
    )(x, prep["w1"], prep["b1"], prep["w2"], prep["b2"],
      prep["w3"], prep["b3"], prep["w4"], prep["b4"])

    # Slice away the padded batch rows and padded output columns.
    return out[:B, :output_dim]


def init_mlp_params(key, input_dim, output_dim):
    """Deterministic synthetic init matching the torch.nn.Linear shapes."""
    dims = [(input_dim, 512), (512, 512), (512, 64), (64, output_dim)]
    params = {}
    for idx, (fan_in, fan_out) in enumerate(dims, start=1):
        key, kw, kb = jax.random.split(key, 3)
        bound = 1.0 / jnp.sqrt(fan_in)
        # stored as (in, out); PyTorch Linear keeps (out, in) -> transposed here
        params[f"w{idx}"] = jax.random.uniform(
            kw, (fan_in, fan_out), jnp.float32, -bound, bound)
        params[f"b{idx}"] = jax.random.uniform(
            kb, (1, fan_out), jnp.float32, -bound, bound)
    return params


def mlp_reference(x, params):
    """Pure-JAX reference (same bf16-operand / f32-accumulate matmul recipe)."""
    def lin(h, w, b):
        return jnp.dot(h.astype(jnp.bfloat16), w.astype(jnp.bfloat16),
                       preferred_element_type=jnp.float32) + b
    h = jax.nn.relu(lin(x, params["w1"], params["b1"]))
    h = jax.nn.relu(lin(h, params["w2"], params["b2"]))
    h = jax.nn.relu(lin(h, params["w3"], params["b3"]))
    return jax.nn.softmax(lin(h, params["w4"], params["b4"]), axis=1)


if __name__ == "__main__":
    key = jax.random.PRNGKey(0)
    kx, kp, kx2 = jax.random.split(key, 3)

    input_dim, output_dim = 32, 10
    params = init_mlp_params(kp, input_dim, output_dim)
    prep, out_dim = prepare_params(params)

    # Small primary test (single tile; tile auto-caps to the batch).
    batch = 16
    x = jax.random.normal(kx, (batch, input_dim), jnp.float32)
    out = jax.block_until_ready(mlp_forward(x, prep, out_dim))
    ref = mlp_reference(x, params)
    assert out.shape == (batch, output_dim)
    assert jnp.allclose(out, ref, atol=2e-3, rtol=2e-3), "mismatch vs reference"
    assert jnp.allclose(jnp.sum(out, axis=1), 1.0, atol=1e-3), "rows must sum to 1"

    # Ragged batch spanning multiple grid steps (exercises tile split + tail
    # padding + slicing back).
    batch2 = 200
    x2 = jax.random.normal(kx2, (batch2, input_dim), jnp.float32)
    out2 = jax.block_until_ready(mlp_forward(x2, prep, out_dim, batch_tile=128))
    ref2 = mlp_reference(x2, params)
    assert out2.shape == (batch2, output_dim)
    assert jnp.allclose(out2, ref2, atol=2e-3, rtol=2e-3), "ragged-batch mismatch"
    assert jnp.allclose(jnp.sum(out2, axis=1), 1.0, atol=1e-3), "rows must sum to 1"

    print("KERNEL_OK")
</pallas_src>

<mosaic_0001>
module attributes {stable_mosaic.version = 11 : i64} {
  func.func @_mlp_kernel(%arg0: i32, %arg1: memref<16x32xf32, #tpu.memory_space<vmem>>, %arg2: memref<32x512xbf16, #tpu.memory_space<vmem>>, %arg3: memref<1x512xf32, #tpu.memory_space<vmem>>, %arg4: memref<512x512xbf16, #tpu.memory_space<vmem>>, %arg5: memref<1x512xf32, #tpu.memory_space<vmem>>, %arg6: memref<512x128xbf16, #tpu.memory_space<vmem>>, %arg7: memref<1x128xf32, #tpu.memory_space<vmem>>, %arg8: memref<128x128xbf16, #tpu.memory_space<vmem>>, %arg9: memref<1x128xf32, #tpu.memory_space<vmem>>, %arg10: memref<16x128xf32, #tpu.memory_space<vmem>>) attributes {dimension_semantics = [#tpu.dimension_semantics<parallel>], iteration_bounds = array<i64: 1>, scalar_prefetch = 0 : i64, scratch_operands = 0 : i64, tpu.core_type = #tpu.core_type<tc>, window_params = [{transform_indices = @transform_0, window_bounds = array<i64: 16, 32>}, {pipeline_mode = #tpu.pipeline_mode<synchronous>, transform_indices = @transform_1, window_bounds = array<i64: 32, 512>}, {pipeline_mode = #tpu.pipeline_mode<synchronous>, transform_indices = @transform_2, window_bounds = array<i64: 1, 512>}, {pipeline_mode = #tpu.pipeline_mode<synchronous>, transform_indices = @transform_3, window_bounds = array<i64: 512, 512>}, {pipeline_mode = #tpu.pipeline_mode<synchronous>, transform_indices = @transform_4, window_bounds = array<i64: 1, 512>}, {pipeline_mode = #tpu.pipeline_mode<synchronous>, transform_indices = @transform_5, window_bounds = array<i64: 512, 128>}, {pipeline_mode = #tpu.pipeline_mode<synchronous>, transform_indices = @transform_6, window_bounds = array<i64: 1, 128>}, {pipeline_mode = #tpu.pipeline_mode<synchronous>, transform_indices = @transform_7, window_bounds = array<i64: 128, 128>}, {pipeline_mode = #tpu.pipeline_mode<synchronous>, transform_indices = @transform_8, window_bounds = array<i64: 1, 128>}, {transform_indices = @transform_9, window_bounds = array<i64: 16, 128>}]} {
    %c0 = arith.constant 0 : index
    %c0_0 = arith.constant 0 : index
    %0 = vector.load %arg1[%c0, %c0_0] : memref<16x32xf32, #tpu.memory_space<vmem>>, vector<16x32xf32>
    %1 = arith.truncf %0 : vector<16x32xf32> to vector<16x32xbf16>
    %c0_1 = arith.constant 0 : index
    %c0_2 = arith.constant 0 : index
    %2 = vector.load %arg2[%c0_1, %c0_2] : memref<32x512xbf16, #tpu.memory_space<vmem>>, vector<32x512xbf16>
    %cst = arith.constant dense<0.000000e+00> : vector<16x512xf32>
    %3 = tpu.matmul %1, %2, %cst {dimension_numbers = #tpu.dot_dimension_numbers<[1], [0], [0], [1], [0, 0, 1, 1], [], []>} : vector<16x32xbf16>, vector<32x512xbf16>, vector<16x512xf32> -> vector<16x512xf32>
    %c0_3 = arith.constant 0 : index
    %c0_4 = arith.constant 0 : index
    %4 = vector.load %arg3[%c0_3, %c0_4] : memref<1x512xf32, #tpu.memory_space<vmem>>, vector<1x512xf32>
    %5 = vector.broadcast %4 : vector<1x512xf32> to vector<16x512xf32>
    %6 = arith.addf %3, %5 : vector<16x512xf32>
    %cst_5 = arith.constant 0.000000e+00 : f32
    %7 = vector.broadcast %cst_5 : f32 to vector<16x512xf32>
    %8 = arith.maximumf %6, %7 : vector<16x512xf32>
    %9 = arith.truncf %8 : vector<16x512xf32> to vector<16x512xbf16>
    %c0_6 = arith.constant 0 : index
    %c0_7 = arith.constant 0 : index
    %10 = vector.load %arg4[%c0_6, %c0_7] : memref<512x512xbf16, #tpu.memory_space<vmem>>, vector<512x512xbf16>
    %cst_8 = arith.constant dense<0.000000e+00> : vector<16x512xf32>
    %11 = tpu.matmul %9, %10, %cst_8 {dimension_numbers = #tpu.dot_dimension_numbers<[1], [0], [0], [1], [0, 0, 1, 1], [], []>} : vector<16x512xbf16>, vector<512x512xbf16>, vector<16x512xf32> -> vector<16x512xf32>
    %c0_9 = arith.constant 0 : index
    %c0_10 = arith.constant 0 : index
    %12 = vector.load %arg5[%c0_9, %c0_10] : memref<1x512xf32, #tpu.memory_space<vmem>>, vector<1x512xf32>
    %13 = vector.broadcast %12 : vector<1x512xf32> to vector<16x512xf32>
    %14 = arith.addf %11, %13 : vector<16x512xf32>
    %cst_11 = arith.constant 0.000000e+00 : f32
    %15 = vector.broadcast %cst_11 : f32 to vector<16x512xf32>
    %16 = arith.maximumf %14, %15 : vector<16x512xf32>
    %17 = arith.truncf %16 : vector<16x512xf32> to vector<16x512xbf16>
    %c0_12 = arith.constant 0 : index
    %c0_13 = arith.constant 0 : index
    %18 = vector.load %arg6[%c0_12, %c0_13] : memref<512x128xbf16, #tpu.memory_space<vmem>>, vector<512x128xbf16>
    %cst_14 = arith.constant dense<0.000000e+00> : vector<16x128xf32>
    %19 = tpu.matmul %17, %18, %cst_14 {dimension_numbers = #tpu.dot_dimension_numbers<[1], [0], [0], [1], [0, 0, 1, 1], [], []>} : vector<16x512xbf16>, vector<512x128xbf16>, vector<16x128xf32> -> vector<16x128xf32>
    %c0_15 = arith.constant 0 : index
    %c0_16 = arith.constant 0 : index
    %20 = vector.load %arg7[%c0_15, %c0_16] : memref<1x128xf32, #tpu.memory_space<vmem>>, vector<1x128xf32>
    %21 = vector.broadcast %20 : vector<1x128xf32> to vector<16x128xf32>
    %22 = arith.addf %19, %21 : vector<16x128xf32>
    %cst_17 = arith.constant 0.000000e+00 : f32
    %23 = vector.broadcast %cst_17 : f32 to vector<16x128xf32>
    %24 = arith.maximumf %22, %23 : vector<16x128xf32>
    %25 = arith.truncf %24 : vector<16x128xf32> to vector<16x128xbf16>
    %c0_18 = arith.constant 0 : index
    %c0_19 = arith.constant 0 : index
    %26 = vector.load %arg8[%c0_18, %c0_19] : memref<128x128xbf16, #tpu.memory_space<vmem>>, vector<128x128xbf16>
    %cst_20 = arith.constant dense<0.000000e+00> : vector<16x128xf32>
    %27 = tpu.matmul %25, %26, %cst_20 {dimension_numbers = #tpu.dot_dimension_numbers<[1], [0], [0], [1], [0, 0, 1, 1], [], []>} : vector<16x128xbf16>, vector<128x128xbf16>, vector<16x128xf32> -> vector<16x128xf32>
    %c0_21 = arith.constant 0 : index
    %c0_22 = arith.constant 0 : index
    %28 = vector.load %arg9[%c0_21, %c0_22] : memref<1x128xf32, #tpu.memory_space<vmem>>, vector<1x128xf32>
    %29 = vector.broadcast %28 : vector<1x128xf32> to vector<16x128xf32>
    %30 = arith.addf %27, %29 : vector<16x128xf32>
    %cst_23 = arith.constant dense<0xFF800000> : vector<16xf32>
    %31 = vector.multi_reduction <maximumf>, %30, %cst_23 [1] : vector<16x128xf32> to vector<16xf32>
    %32 = vector.shape_cast %31 : vector<16xf32> to vector<16x1xf32>
    %33 = vector.broadcast %32 : vector<16x1xf32> to vector<16x128xf32>
    %34 = arith.subf %30, %33 : vector<16x128xf32>
    %35 = math.exp %34 : vector<16x128xf32>
    %cst_24 = arith.constant dense<0.000000e+00> : vector<16xf32>
    %36 = vector.multi_reduction <add>, %35, %cst_24 [1] : vector<16x128xf32> to vector<16xf32>
    %37 = vector.shape_cast %36 : vector<16xf32> to vector<16x1xf32>
    %38 = vector.broadcast %37 : vector<16x1xf32> to vector<16x128xf32>
    %39 = arith.divf %35, %38 : vector<16x128xf32>
    %c0_25 = arith.constant 0 : index
    %c0_26 = arith.constant 0 : index
    %40 = vector.load %arg10[%c0_25, %c0_26] : memref<16x128xf32, #tpu.memory_space<vmem>>, vector<16x128xf32>
    tpu.vector_store %arg10[%c0_25, %c0_26], %39 {strides = array<i32>} : memref<16x128xf32, #tpu.memory_space<vmem>>, vector<16x128xf32>,
    return
  }
  func.func @transform_0(%arg0: i32) -> (i32, i32) {
    %c0_i32 = arith.constant 0 : i32
    %c0_i32_0 = arith.constant 0 : i32
    return %arg0, %c0_i32 : i32, i32
  }
  func.func @transform_1(%arg0: i32) -> (i32, i32) {
    %c0_i32 = arith.constant 0 : i32
    %c0_i32_0 = arith.constant 0 : i32
    %c0_i32_1 = arith.constant 0 : i32
    return %c0_i32, %c0_i32_0 : i32, i32
  }
  func.func @transform_2(%arg0: i32) -> (i32, i32) {
    %c0_i32 = arith.constant 0 : i32
    %c0_i32_0 = arith.constant 0 : i32
    %c0_i32_1 = arith.constant 0 : i32
    return %c0_i32, %c0_i32_0 : i32, i32
  }
  func.func @transform_3(%arg0: i32) -> (i32, i32) {
    %c0_i32 = arith.constant 0 : i32
    %c0_i32_0 = arith.constant 0 : i32
    %c0_i32_1 = arith.constant 0 : i32
    return %c0_i32, %c0_i32_0 : i32, i32
  }
  func.func @transform_4(%arg0: i32) -> (i32, i32) {
    %c0_i32 = arith.constant 0 : i32
    %c0_i32_0 = arith.constant 0 : i32
    %c0_i32_1 = arith.constant 0 : i32
    return %c0_i32, %c0_i32_0 : i32, i32
  }
  func.func @transform_5(%arg0: i32) -> (i32, i32) {
    %c0_i32 = arith.constant 0 : i32
    %c0_i32_0 = arith.constant 0 : i32
    %c0_i32_1 = arith.constant 0 : i32
    return %c0_i32, %c0_i32_0 : i32, i32
  }
  func.func @transform_6(%arg0: i32) -> (i32, i32) {
    %c0_i32 = arith.constant 0 : i32
    %c0_i32_0 = arith.constant 0 : i32
    %c0_i32_1 = arith.constant 0 : i32
    return %c0_i32, %c0_i32_0 : i32, i32
  }
  func.func @transform_7(%arg0: i32) -> (i32, i32) {
    %c0_i32 = arith.constant 0 : i32
    %c0_i32_0 = arith.constant 0 : i32
    %c0_i32_1 = arith.constant 0 : i32
    return %c0_i32, %c0_i32_0 : i32, i32
  }
  func.func @transform_8(%arg0: i32) -> (i32, i32) {
    %c0_i32 = arith.constant 0 : i32
    %c0_i32_0 = arith.constant 0 : i32
    %c0_i32_1 = arith.constant 0 : i32
    return %c0_i32, %c0_i32_0 : i32, i32
  }
  func.func @transform_9(%arg0: i32) -> (i32, i32) {
    %c0_i32 = arith.constant 0 : i32
    %c0_i32_0 = arith.constant 0 : i32
    return %arg0, %c0_i32 : i32, i32
  }
}

</mosaic_0001>

<bundles_post_ra>
// kernel: mlp_forward.1
= control target key start
LH: loop header
LB: loop body
LE: loop exit
PB: predicated region body
PF: predicated region fallthrough
CT: control target
= control target key end

     0   :  { %14 = vsyncpa [#allocation3], 0  ;;  %s3017_s0 = inlined_call_operand.hbm [shape: f32[16,32], index: 0, kind: input, shape index: {}]   ;;  %s3018_s1 = inlined_call_operand.hbm [shape: bf16[32,512], index: 1, kind: input, shape index: {}]   ;;  %s3019_s2 = inlined_call_operand.hbm [shape: f32[1,512], index: 2, kind: input, shape index: {}]   ;;  %s3020_s3 = inlined_call_operand.hbm [shape: bf16[512,512], index: 3, kind: input, shape index: {}]   ;;  %s3021_s4 = inlined_call_operand.hbm [shape: f32[1,512], index: 4, kind: input, shape index: {}]   ;;  %s3022_s5 = inlined_call_operand.hbm [shape: bf16[512,128], index: 5, kind: input, shape index: {}]   ;;  %s3023_s6 = inlined_call_operand.vmem [shape: f32[1,128], index: 6, kind: input, shape index: {}]   ;;  %s3024_s7 = inlined_call_operand.hbm [shape: bf16[128,128], index: 7, kind: input, shape index: {}]   ;;  %s3025_s8 = inlined_call_operand.vmem [shape: f32[1,128], index: 8, kind: input, shape index: {}]   ;;  %s3026_s9 = inlined_call_operand.hbm [shape: f32[16,128], index: 9, kind: output, shape index: {}]  }
   0x1   :  { %15 = vsyncpa [#allocation6], 0 }
   0x2   :  { %16 = vsyncpa [#allocation9], 0 }
   0x3   :  { %17 = vsyncpa [#allocation12], 0  ;;  %s36_s11 = sshll.u32 %s3018_s1, 4  ;;  %s37_s11 = int_to_ptr.hbm [resolvable:$true] %s36_s11 }
   0x4   :  { %18 = vsyncpa [#allocation4], 0  ;;  %s2865_s12 = smov [#allocation5]   ;;  %s60_s16 = sshll.u32 %s3020_s3, 4  ;;  %s61_s16 = int_to_ptr.hbm [resolvable:$true] %s60_s16 }
   0x5   :  { %s38_s13 = sshll.u32 %s2865_s12, 4  ;;  %s2866_s17 = smov 256   ;;  %s39_s13 = int_to_ptr.vmem [resolvable:$true] %s38_s13 }
   0x6   :  { %s2867_s18 = smov 16   ;;  %s2868_s19 = smov [#allocation8]  }
   0x7   :  { %44 = dma.hbm_to_vmem [thread:$0]  %s37_s11, 1024, %s39_s13, [#allocation6], %s2866_s17, %s2866_s17, %s2867_s18  }
   0x8   :  { %s62_s20 = sshll.u32 %s2868_s19, 4  ;;  %s84_s23 = sshll.u32 %s3022_s5, 4  ;;  %s63_s20 = int_to_ptr.vmem [resolvable:$true] %s62_s20  ;;  %s85_s23 = int_to_ptr.hbm [resolvable:$true] %s84_s23 }
   0x9   :  { %68 = dma.hbm_to_vmem [thread:$0]  %s61_s16, 16384, %s63_s20, [#allocation9], %s2866_s17, %s2866_s17, %s2867_s18  }
   0xa   :  { %s2869_s1 = smov [#allocation11]   ;;  %s23_s3 = sshll.u32 %s3017_s0, 4  ;;  %s24_s3 = int_to_ptr.hbm [resolvable:$true] %s23_s3 }
   0xb   :  { %s86_s24 = sshll.u32 %s2869_s1, 4  ;;  %s2870_s27 = smov 64   ;;  %s87_s24 = int_to_ptr.vmem [resolvable:$true] %s86_s24 }
   0xc   :  { %s2871_s28 = smov 4   ;;  %s2872_s29 = smov [#allocation2]  }
   0xd   :  { %92 = dma.hbm_to_vmem [thread:$0]  %s85_s23, 4096, %s87_s24, [#allocation12], %s2870_s27, %s2870_s27, %s2871_s28  }
   0xe   :  { %s25_s30 = sshll.u32 %s2872_s29, 4  ;;  %s2873_s5 = smov 128   ;;  %s26_s30 = int_to_ptr.vmem [resolvable:$true] %s25_s30 }
   0xf   :  { %s2874_s10 = smov 8   ;;  %s50_s0 = sshll.u32 %s3019_s2, 4  ;;  %s51_s0 = int_to_ptr.hbm [resolvable:$true] %s50_s0 }
  0x10   :  { %31 = dma.hbm_to_vmem [thread:$0]  %s24_s3, 256, %s26_s30, [#allocation3], %s2873_s5, %s2873_s5, %s2874_s10  }
  0x11   :  { %s2875_s13 = smov [#allocation7]   ;;  %s74_s17 = sshll.u32 %s3021_s4, 4  ;;  %s75_s17 = int_to_ptr.hbm [resolvable:$true] %s74_s17 }
  0x12   :  { %s52_s14 = sshll.u32 %s2875_s13, 4  ;;  %s2876_s18 = smov [#allocation10]   ;;  %s53_s14 = int_to_ptr.vmem [resolvable:$true] %s52_s14 }
  0x13   :  { %55 = dma.hbm_to_vmem [thread:$0]  %s51_s0, 64, %s53_s14, [#allocation6]  }
  0x14   :  { %s76_s19 = sshll.u32 %s2876_s18, 4  ;;  %s99_s22 = sshll.u32 %s3024_s7, 4  ;;  %s77_s19 = int_to_ptr.vmem [resolvable:$true] %s76_s19  ;;  %s100_s22 = int_to_ptr.hbm [resolvable:$true] %s99_s22 }
  0x15   :  { %79 = dma.hbm_to_vmem [thread:$0]  %s75_s17, 64, %s77_s19, [#allocation9]  }
  0x16   :  { %s2877_s2 = smov [#allocation13]  }
  0x17   :  { %s101_s23 = sshll.u32 %s2877_s2, 4  ;;  %s102_s23 = int_to_ptr.vmem [resolvable:$true] %s101_s23 }
  0x18   :  { %107 = dma.hbm_to_vmem [thread:$0]  %s100_s22, 1024, %s102_s23, [#allocation12], %s2870_s27, %s2870_s27, %s2871_s28  }
  0x19   :  { %2855 = dma.done.wait [#allocation3], 256  }
  0x1a   :  { %2856 = vsyncadd [#allocation3], 4294967040 }
  0x1b   :  { %2857 = dma.done.wait [#allocation6], 1088  }
  0x1c   :  { %2858 = vsyncadd [#allocation6], 4294966208 }
  0x1d   :  { %2859 = dma.done.wait [#allocation9], 16448  }
  0x1e   :  { %2860 = vsyncadd [#allocation9], 4294950848 }
  0x1f   :  { %2861 = dma.done.wait [#allocation12], 5120  }
  0x20   :  { %2862 = vsyncadd [#allocation12], 4294962176  ;;  %v1773_v0 = vld [vmem:[#allocation5 + $0x20] sm:$0xf]  ;;  %v2469_v1 = vld [vmem:[#allocation5 + $0x2c] sm:$0xf0] }
  0x21   :  { %v1781_v2 = vld [vmem:[#allocation5 + $0x28] sm:$0xf]  ;;  %v1774_v3 = vor.u32 %v2469_v1, %v1773_v0  ;;  %v2470_v4 = vld [vmem:[#allocation5 + $0x34] sm:$0xf0]  ;;  %v2468_v5 = vld [vmem:[#allocation5 + $0x2c] sm:$0xf] }
  0x22   :  { %v1783_v6 = vld [vmem:[#allocation5 + $0x38] sm:$0xf0]  ;;  %v1782_v7 = vor.u32 %v2470_v4, %v1781_v2  ;;  %v1757_v9 = vld [vmem:[#allocation5] sm:$0xf]  ;;  %v2465_v10 = vld [vmem:[#allocation5 + $0xc] sm:$0xf0] }
  0x23   :  { %v1786_v8 = vor.u32 %v2468_v5, %v1783_v6  ;;  %v1765_v11 = vld [vmem:[#allocation5 + $0x8] sm:$0xf]  ;;  %210 = vmatpush.bf16.msra.mxu1 %v1774_v3  ;;  %v1758_v12 = vor.u32 %v2465_v10, %v1757_v9  ;;  %v2466_v13 = vld [vmem:[#allocation5 + $0x14] sm:$0xf0]  ;;  %v2464_v14 = vld [vmem:[#allocation5 + $0xc] sm:$0xf] }
  0x24   :  { %v1767_v15 = vld [vmem:[#allocation5 + $0x18] sm:$0xf0]  ;;  %238 = vmatpush.bf16.msra.mxu2 %v1782_v7  ;;  %v1766_v16 = vor.u32 %v2466_v13, %v1765_v11  ;;  %v139_v18 = vld [vmem:[#allocation2] sm:$0xff]  ;;  %vm200_vm0 = vcmask 261120   ;;  %v2467_v20 = vld [vmem:[#allocation5 + $0x24] sm:$0xf] }
  0x25   :  { %252 = vmatpush.bf16.msra.mxu3 %v1786_v8  ;;  %v1770_v17 = vor.u32 %v2464_v14, %v1767_v15  ;;  %v140_v19 = vld [vmem:[#allocation2 + $0x8] sm:$0xff]  ;;  %v1775_v21 = vld [vmem:[#allocation5 + $0x30] sm:$0xf0]  ;;  %v2463_v22 = vld [vmem:[#allocation5 + $0x4] sm:$0xf]  ;;  %s1739_s3 = sshll.u32 %s3026_s9, 4  ;;  %s1740_s3 = int_to_ptr.hbm [resolvable:$true] %s1739_s3 }
  0x26   :  { %v1759_v23 = vld [vmem:[#allocation5 + $0x10] sm:$0xf0]  ;;  %v2959_v24 = vpack.c.bf16 %v140_v19, %v139_v18  ;;  %v1778_v25 = vor.u32 %v2467_v20, %v1775_v21  ;;  %v1905_v26 = vld [vmem:[#allocation8 + $0xe0] sm:$0xf] }
  0x27   :  { %v2501_v27 = vld [vmem:[#allocation8 + $0xec] sm:$0xf0]  ;;  %v1889_v28 = vld [vmem:[#allocation8 + $0xc0] sm:$0xf]  ;;  %211 = vmatpush.bf16.msra.mxu1 %v1758_v12  ;;  %v1762_v36 = vor.u32 %v2463_v22, %v1759_v23 }
  0x28   :  { %v1906_v29 = vor.u32 %v2501_v27, %v1905_v26  ;;  %v2497_v30 = vld [vmem:[#allocation8 + $0xcc] sm:$0xf0]  ;;  %v2161_v31 = vld [vmem:[#allocation8 + $0x2e0] sm:$0xf]  ;;  %239 = vmatpush.bf16.msra.mxu2 %v1766_v16 }
  0x29   :  { %v2565_v32 = vld [vmem:[#allocation8 + $0x2ec] sm:$0xf0]  ;;  %253 = vmatpush.bf16.msra.mxu3 %v1770_v17  ;;  %v2289_v34 = vld [vmem:[#allocation8 + $0x3e0] sm:$0xf]  ;;  %v1890_v37 = vor.u32 %v2497_v30, %v1889_v28 }
  0x2a   :  { %v2162_v33 = vor.u32 %v2565_v32, %v2161_v31  ;;  %v2597_v35 = vld [vmem:[#allocation8 + $0x3ec] sm:$0xf0]  ;;  %1050 = vmatpush.bf16.msra.mxu0 %v1906_v29  ;;  %v1873_v39 = vld [vmem:[#allocation8 + $0xa0] sm:$0xf]  ;;  %1787 = vmatmul.msk.bf16.vlgmr.msra.gmra.mxu1 %vm200_vm0, %v2959_v24 }
  0x2b   :  { %224 = vmatpush.bf16.msrb.mxu1 %v1778_v25  ;;  %v2290_v38 = vor.u32 %v2597_v35, %v2289_v34  ;;  %v2145_v40 = vld [vmem:[#allocation8 + $0x2c0] sm:$0xf]  ;;  %v2561_v41 = vld [vmem:[#allocation8 + $0x2cc] sm:$0xf0]  ;;  %1789 = vmatmul.msk.bf16.vlgmr.msra.gmra.mxu2 %vm200_vm0, %v2959_v24 }
  0x2c   :  { %1078 = vmatpush.bf16.msrb.mxu2 %v2162_v33  ;;  %v2493_v42 = vld [vmem:[#allocation8 + $0xac] sm:$0xf0]  ;;  %v2146_v43 = vor.u32 %v2561_v41, %v2145_v40  ;;  %v2273_v44 = vld [vmem:[#allocation8 + $0x3c0] sm:$0xf]  ;;  %1790 = vmatmul.msk.bf16.vlgmr.msra.gmra.mxu3 %vm200_vm0, %v2959_v24 }
  0x2d   :  { %v2593_v45 = vld [vmem:[#allocation8 + $0x3cc] sm:$0xf0]  ;;  %v2129_v46 = vld [vmem:[#allocation8 + $0x2a0] sm:$0xf]  ;;  %1092 = vmatpush.bf16.msrb.mxu3 %v2290_v38  ;;  %v1874_v50 = vor.u32 %v2493_v42, %v1873_v39 }
  0x2e   :  { %v2557_v47 = vld [vmem:[#allocation8 + $0x2ac] sm:$0xf0]  ;;  %v2274_v48 = vor.u32 %v2593_v45, %v2273_v44  ;;  %v2257_v49 = vld [vmem:[#allocation8 + $0x3a0] sm:$0xf]  ;;  %1051 = vmatpush.bf16.msra.mxu0 %v1890_v37  ;;  %v1907_v44 = vld [vmem:[#allocation8 + $0xf0] sm:$0xf0] }
  0x2f   :  { %225 = vmatpush.bf16.msrb.mxu1 %v1762_v36  ;;  %v2589_v51 = vld [vmem:[#allocation8 + $0x3ac] sm:$0xf0]  ;;  %v2033_v52 = vld [vmem:[#allocation8 + $0x1e0] sm:$0xf]  ;;  %v2130_v56 = vor.u32 %v2557_v47, %v2129_v46 }
  0x30   :  { %v2533_v53 = vld [vmem:[#allocation8 + $0x1ec] sm:$0xf0]  ;;  %1079 = vmatpush.bf16.msrb.mxu2 %v2146_v43  ;;  %v1857_v54 = vld [vmem:[#allocation8 + $0x80] sm:$0xf]  ;;  %v2258_v60 = vor.u32 %v2589_v51, %v2257_v49  ;;  %v2563_v49 = vld [vmem:[#allocation8 + $0x2e4] sm:$0xf] }
  0x31   :  { %v2489_v55 = vld [vmem:[#allocation8 + $0x8c] sm:$0xf0]  ;;  %v2034_v57 = vor.u32 %v2533_v53, %v2033_v52  ;;  %v2113_v58 = vld [vmem:[#allocation8 + $0x280] sm:$0xf]  ;;  %1093 = vmatpush.bf16.msrb.mxu3 %v2274_v48  ;;  %v2163_v51 = vld [vmem:[#allocation8 + $0x2f0] sm:$0xf0] }
  0x32   :  { %v2553_v59 = vld [vmem:[#allocation8 + $0x28c] sm:$0xf0]  ;;  %v2017_v61 = vld [vmem:[#allocation8 + $0x1c0] sm:$0xf]  ;;  %1052 = vmatpush.bf16.msra.mxu0 %v1874_v50  ;;  %v1858_v63 = vor.u32 %v2489_v55, %v1857_v54 }
  0x33   :  { %1064 = vmatpush.bf16.msra.mxu1 %v2034_v57  ;;  %v2529_v62 = vld [vmem:[#allocation8 + $0x1cc] sm:$0xf0]  ;;  %v2241_v0 = vld [vmem:[#allocation8 + $0x380] sm:$0xf]  ;;  %v2114_v5 = vor.u32 %v2553_v59, %v2113_v58  ;;  %v2595_v59 = vld [vmem:[#allocation8 + $0x3e4] sm:$0xf] }
  0x34   :  { %v2585_v1 = vld [vmem:[#allocation8 + $0x38c] sm:$0xf0]  ;;  %v2018_v2 = vor.u32 %v2529_v62, %v2017_v61  ;;  %1080 = vmatpush.bf16.msrb.mxu2 %v2130_v56  ;;  %v1841_v3 = vld [vmem:[#allocation8 + $0x60] sm:$0xf]  ;;  %v2495_v61 = vld [vmem:[#allocation8 + $0xc4] sm:$0xf] }
  0x35   :  { %v2485_v4 = vld [vmem:[#allocation8 + $0x6c] sm:$0xf0]  ;;  %v2001_v6 = vld [vmem:[#allocation8 + $0x1a0] sm:$0xf]  ;;  %1094 = vmatpush.bf16.msrb.mxu3 %v2258_v60  ;;  %v2242_v10 = vor.u32 %v2585_v1, %v2241_v0  ;;  %v2291_v60 = vld [vmem:[#allocation8 + $0x3f0] sm:$0xf0] }
  0x36   :  { %v2097_v7 = vld [vmem:[#allocation8 + $0x260] sm:$0xf]  ;;  %v2549_v8 = vld [vmem:[#allocation8 + $0x26c] sm:$0xf0]  ;;  %1053 = vmatpush.bf16.msra.mxu0 %v1858_v63  ;;  %v1842_v13 = vor.u32 %v2485_v4, %v1841_v3  ;;  %v1891_v62 = vld [vmem:[#allocation8 + $0xd0] sm:$0xf0]  ;;  %v2166_v63 = vor.u32 %v2563_v49, %v2163_v51  ;;  %v2294_v4 = vor.u32 %v2595_v59, %v2291_v60 }
  0x37   :  { %v2525_v9 = vld [vmem:[#allocation8 + $0x1ac] sm:$0xf0]  ;;  %1065 = vmatpush.bf16.msra.mxu1 %v2018_v2  ;;  %v2225_v11 = vld [vmem:[#allocation8 + $0x360] sm:$0xf]  ;;  %v2098_v19 = vor.u32 %v2549_v8, %v2097_v7  ;;  %v2559_v1 = vld [vmem:[#allocation8 + $0x2c4] sm:$0xf] }
  0x38   :  { %v2002_v12 = vor.u32 %v2525_v9, %v2001_v6  ;;  %v2581_v14 = vld [vmem:[#allocation8 + $0x36c] sm:$0xf0]  ;;  %v1985_v15 = vld [vmem:[#allocation8 + $0x180] sm:$0xf]  ;;  %1081 = vmatpush.bf16.msrb.mxu2 %v2114_v5  ;;  %v2147_v2 = vld [vmem:[#allocation8 + $0x2d0] sm:$0xf0]  ;;  %v1894_v5 = vor.u32 %v2495_v61, %v1891_v62 }
  0x39   :  { %v2521_v16 = vld [vmem:[#allocation8 + $0x18c] sm:$0xf0]  ;;  %v1825_v17 = vld [vmem:[#allocation8 + $0x40] sm:$0xf]  ;;  %1095 = vmatpush.bf16.msrb.mxu3 %v2242_v10  ;;  %v2226_v22 = vor.u32 %v2581_v14, %v2225_v11  ;;  %v2591_v6 = vld [vmem:[#allocation8 + $0x3c4] sm:$0xf]  ;;  %v2150_v10 = vor.u32 %v2559_v1, %v2147_v2 }
  0x3a   :  { %v2481_v18 = vld [vmem:[#allocation8 + $0x4c] sm:$0xf0]  ;;  %v2081_v20 = vld [vmem:[#allocation8 + $0x240] sm:$0xf]  ;;  %v1986_v25 = vor.u32 %v2521_v16, %v1985_v15  ;;  %1054 = vmatpush.bf16.msra.mxu0 %v1842_v13  ;;  %1788 = vmatmul.msk.bf16.vlgmr.msrb.gmra.mxu1 %vm200_vm0, %v2959_v24  ;;  %v2499_v24 = vld [vmem:[#allocation8 + $0xe4] sm:$0xf] }
  0x3b   :  { %v2545_v21 = vld [vmem:[#allocation8 + $0x24c] sm:$0xf0]  ;;  %1066 = vmatpush.bf16.msra.mxu1 %v2002_v12  ;;  %v2209_v23 = vld [vmem:[#allocation8 + $0x340] sm:$0xf]  ;;  %v1826_v26 = vor.u32 %v2481_v18, %v1825_v17  ;;  %v1910_v57 = vor.u32 %v2499_v24, %v1907_v44  ;;  %v2275_v7 = vld [vmem:[#allocation8 + $0x3d0] sm:$0xf0] }
  0x3c   :  { %v2577_v27 = vld [vmem:[#allocation8 + $0x34c] sm:$0xf0]  ;;  %v1969_v28 = vld [vmem:[#allocation8 + $0x160] sm:$0xf]  ;;  %1082 = vmatpush.bf16.msrb.mxu2 %v2098_v19  ;;  %v2082_v32 = vor.u32 %v2545_v21, %v2081_v20  ;;  %v2491_v8 = vld [vmem:[#allocation8 + $0xa4] sm:$0xf]  ;;  %v2278_v11 = vor.u32 %v2591_v6, %v2275_v7 }
  0x3d   :  { %v2517_v29 = vld [vmem:[#allocation8 + $0x16c] sm:$0xf0]  ;;  %v1809_v30 = vld [vmem:[#allocation8 + $0x20] sm:$0xf]  ;;  %1096 = vmatpush.bf16.msrb.mxu3 %v2226_v22  ;;  %v2210_v35 = vor.u32 %v2577_v27, %v2209_v23  ;;  %v1875_v9 = vld [vmem:[#allocation8 + $0xb0] sm:$0xf0] }
  0x3e   :  { %v2477_v31 = vld [vmem:[#allocation8 + $0x2c] sm:$0xf0]  ;;  %v2065_v33 = vld [vmem:[#allocation8 + $0x220] sm:$0xf]  ;;  %v1970_v39 = vor.u32 %v2517_v29, %v1969_v28  ;;  %1055 = vmatpush.bf16.msra.mxu0 %v1826_v26  ;;  %v1878_v12 = vor.u32 %v2491_v8, %v1875_v9  ;;  %v2487_v13 = vld [vmem:[#allocation8 + $0x84] sm:$0xf] }
  0x3f   :  { %v2541_v34 = vld [vmem:[#allocation8 + $0x22c] sm:$0xf0]  ;;  %v1793_v36 = vld [vmem:[#allocation8] sm:$0xf]  ;;  %1067 = vmatpush.bf16.msra.mxu1 %v1986_v25  ;;  %v1810_v40 = vor.u32 %v2477_v31, %v1809_v30  ;;  %v1859_v14 = vld [vmem:[#allocation8 + $0x90] sm:$0xf0] }
  0x40   :  { %v2473_v37 = vld [vmem:[#allocation8 + $0xc] sm:$0xf0]  ;;  %v2193_v38 = vld [vmem:[#allocation8 + $0x320] sm:$0xf]  ;;  %1083 = vmatpush.bf16.msrb.mxu2 %v2082_v32  ;;  %v2066_v45 = vor.u32 %v2541_v34, %v2065_v33  ;;  %v1862_v15 = vor.u32 %v2487_v13, %v1859_v14  ;;  %v2555_v16 = vld [vmem:[#allocation8 + $0x2a4] sm:$0xf] }
  0x41   :  { %v2573_v41 = vld [vmem:[#allocation8 + $0x32c] sm:$0xf0]  ;;  %v1953_v42 = vld [vmem:[#allocation8 + $0x140] sm:$0xf]  ;;  %1097 = vmatpush.bf16.msrb.mxu3 %v2210_v35  ;;  %v1794_v53 = vor.u32 %v2473_v37, %v1793_v36  ;;  %v2131_v17 = vld [vmem:[#allocation8 + $0x2b0] sm:$0xf0] }
  0x42   :  { %v2513_v43 = vld [vmem:[#allocation8 + $0x14c] sm:$0xf0]  ;;  %v2049_v46 = vld [vmem:[#allocation8 + $0x200] sm:$0xf]  ;;  %v2194_v50 = vor.u32 %v2573_v41, %v2193_v38  ;;  %1056 = vmatpush.bf16.msra.mxu0 %v1810_v40  ;;  %v2587_v18 = vld [vmem:[#allocation8 + $0x3a4] sm:$0xf]  ;;  %v2134_v19 = vor.u32 %v2555_v16, %v2131_v17 }
  0x43   :  { %v2537_v47 = vld [vmem:[#allocation8 + $0x20c] sm:$0xf0]  ;;  %v2177_v48 = vld [vmem:[#allocation8 + $0x300] sm:$0xf]  ;;  %1068 = vmatpush.bf16.msra.mxu1 %v1970_v39  ;;  %v1954_v52 = vor.u32 %v2513_v43, %v1953_v42  ;;  %v2259_v20 = vld [vmem:[#allocation8 + $0x3b0] sm:$0xf0] }
  0x44   :  { %v2569_v54 = vld [vmem:[#allocation8 + $0x30c] sm:$0xf0]  ;;  %v1937_v55 = vld [vmem:[#allocation8 + $0x120] sm:$0xf]  ;;  %1084 = vmatpush.bf16.msrb.mxu2 %v2066_v45  ;;  %v2050_v58 = vor.u32 %v2537_v47, %v2049_v46  ;;  %v2262_v23 = vor.u32 %v2587_v18, %v2259_v20  ;;  %v2483_v26 = vld [vmem:[#allocation8 + $0x64] sm:$0xf] }
  0x45   :  { %v2509_v56 = vld [vmem:[#allocation8 + $0x12c] sm:$0xf0]  ;;  %1098 = vmatpush.bf16.msrb.mxu3 %v2194_v50  ;;  %v2178_v0 = vor.u32 %v2569_v54, %v2177_v48  ;;  %v1921_v21 = vld [vmem:[#allocation8 + $0x100] sm:$0xf]  ;;  %v1843_v27 = vld [vmem:[#allocation8 + $0x70] sm:$0xf0] }
  0x46   :  { %v1938_v3 = vor.u32 %v2509_v56, %v1937_v55  ;;  %1057 = vmatpush.bf16.msra.mxu0 %v1794_v53  ;;  %v2505_v22 = vld [vmem:[#allocation8 + $0x10c] sm:$0xf0]  ;;  %v2531_v28 = vld [vmem:[#allocation8 + $0x1e4] sm:$0xf]  ;;  %v1846_v29 = vor.u32 %v2483_v26, %v1843_v27  ;;  %v2035_v30 = vld [vmem:[#allocation8 + $0x1f0] sm:$0xf0] }
  0x47   :  { %1069 = vmatpush.bf16.msra.mxu1 %v1954_v52  ;;  %v1922_v25 = vor.u32 %v2505_v22, %v1921_v21  ;;  %v2038_v31 = vor.u32 %v2531_v28, %v2035_v30  ;;  %v2551_v32 = vld [vmem:[#allocation8 + $0x284] sm:$0xf]  ;;  %v2115_v33 = vld [vmem:[#allocation8 + $0x290] sm:$0xf0]  ;;  %v2969_v28 = vld [vmem:[#allocation7] sm:$0xf] }
  0x48   :  { %1085 = vmatpush.bf16.msrb.mxu2 %v2050_v58  ;;  %v2583_v34 = vld [vmem:[#allocation8 + $0x384] sm:$0xf]  ;;  %v2118_v35 = vor.u32 %v2551_v32, %v2115_v33  ;;  %v2243_v36 = vld [vmem:[#allocation8 + $0x390] sm:$0xf0]  ;;  %v152_v30 = vperm.slane %v2969_v28, 0 }
  0x49   :  { %1099 = vmatpush.bf16.msrb.mxu3 %v2178_v0  ;;  %v2246_v37 = vor.u32 %v2583_v34, %v2243_v36  ;;  %v2479_v38 = vld [vmem:[#allocation8 + $0x44] sm:$0xf]  ;;  %v1827_v39 = vld [vmem:[#allocation8 + $0x50] sm:$0xf0]  ;;  %v155_v34 = vperm.slane %v2969_v28, 3 }
  0x4a   :  { %1106 = vmatpush.bf16.msrb.mxu0 %v1910_v57  ;;  %v2527_v40 = vld [vmem:[#allocation8 + $0x1c4] sm:$0xf]  ;;  %v1830_v41 = vor.u32 %v2479_v38, %v1827_v39  ;;  %v2019_v42 = vld [vmem:[#allocation8 + $0x1d0] sm:$0xf0]  ;;  %v2502_v38 = vld [vmem:[#allocation8 + $0xf4] sm:$0xf0] }
  0x4b   :  { %1070 = vmatpush.bf16.msra.mxu1 %v1938_v3  ;;  %v2022_v43 = vor.u32 %v2527_v40, %v2019_v42  ;;  %v2547_v24 = vld [vmem:[#allocation8 + $0x264] sm:$0xf]  ;;  %v2099_v44 = vld [vmem:[#allocation8 + $0x270] sm:$0xf0]  ;;  %v154_v39 = vperm.slane %v2969_v28, 2 }
  0x4c   :  { %1134 = vmatpush.bf16.msra.mxu2 %v2166_v63  ;;  %v2579_v45 = vld [vmem:[#allocation8 + $0x364] sm:$0xf]  ;;  %v2102_v46 = vor.u32 %v2547_v24, %v2099_v44  ;;  %v2227_v47 = vld [vmem:[#allocation8 + $0x370] sm:$0xf0]  ;;  %v1897_v44 = vld [vmem:[#allocation8 + $0xc8] sm:$0xf] }
  0x4d   :  { %1148 = vmatpush.bf16.msra.mxu3 %v2294_v4  ;;  %v2230_v48 = vor.u32 %v2579_v45, %v2227_v47  ;;  %v2475_v49 = vld [vmem:[#allocation8 + $0x24] sm:$0xf]  ;;  %v1811_v50 = vld [vmem:[#allocation8 + $0x30] sm:$0xf0]  ;;  %v2498_v45 = vld [vmem:[#allocation8 + $0xd4] sm:$0xf0] }
  0x4e   :  { %1107 = vmatpush.bf16.msrb.mxu0 %v1894_v5  ;;  %v2523_v51 = vld [vmem:[#allocation8 + $0x1a4] sm:$0xf]  ;;  %v1814_v52 = vor.u32 %v2475_v49, %v1811_v50  ;;  %v2003_v53 = vld [vmem:[#allocation8 + $0x1b0] sm:$0xf0]  ;;  %v2169_v49 = vld [vmem:[#allocation8 + $0x2e8] sm:$0xf] }
  0x4f   :  { %1071 = vmatpush.bf16.msra.mxu1 %v1922_v25  ;;  %v2006_v54 = vor.u32 %v2523_v51, %v2003_v53  ;;  %v2543_v55 = vld [vmem:[#allocation8 + $0x244] sm:$0xf]  ;;  %v2083_v56 = vld [vmem:[#allocation8 + $0x250] sm:$0xf0]  ;;  %v2566_v50 = vld [vmem:[#allocation8 + $0x2f4] sm:$0xf0] }
  0x50   :  { %1135 = vmatpush.bf16.msra.mxu2 %v2150_v10  ;;  %v2086_v57 = vor.u32 %v2543_v55, %v2083_v56  ;;  %v2575_v58 = vld [vmem:[#allocation8 + $0x344] sm:$0xf]  ;;  %v2211_v59 = vld [vmem:[#allocation8 + $0x350] sm:$0xf0]  ;;  %v1898_v55 = vor.u32 %v2498_v45, %v1897_v44  ;;  %v2297_v56 = vld [vmem:[#allocation8 + $0x3e8] sm:$0xf] }
  0x51   :  { %1149 = vmatpush.bf16.msra.mxu3 %v2278_v11  ;;  %v2214_v60 = vor.u32 %v2575_v58, %v2211_v59  ;;  %v2471_v61 = vld [vmem:[#allocation8 + $0x4] sm:$0xf]  ;;  %v1795_v62 = vld [vmem:[#allocation8 + $0x10] sm:$0xf0]  ;;  %v1881_v58 = vld [vmem:[#allocation8 + $0xa8] sm:$0xf] }
  0x52   :  { %1108 = vmatpush.bf16.msrb.mxu0 %v1878_v12  ;;  %v2519_v63 = vld [vmem:[#allocation8 + $0x184] sm:$0xf]  ;;  %v1798_v0 = vor.u32 %v2471_v61, %v1795_v62  ;;  %v1987_v1 = vld [vmem:[#allocation8 + $0x190] sm:$0xf0]  ;;  %v2494_v59 = vld [vmem:[#allocation8 + $0xb4] sm:$0xf0] }
  0x53   :  { %1120 = vmatpush.bf16.msrb.mxu1 %v2038_v31  ;;  %v1990_v2 = vor.u32 %v2519_v63, %v1987_v1  ;;  %v2539_v3 = vld [vmem:[#allocation8 + $0x224] sm:$0xf]  ;;  %v2067_v4 = vld [vmem:[#allocation8 + $0x230] sm:$0xf0]  ;;  %v153_v63 = vperm.slane %v2969_v28, 1 }
  0x54   :  { %1136 = vmatpush.bf16.msra.mxu2 %v2134_v19  ;;  %v2571_v5 = vld [vmem:[#allocation8 + $0x324] sm:$0xf]  ;;  %v2070_v6 = vor.u32 %v2539_v3, %v2067_v4  ;;  %v2195_v7 = vld [vmem:[#allocation8 + $0x330] sm:$0xf0]  ;;  %v2550_v44 = vld [vmem:[#allocation8 + $0x274] sm:$0xf0] }
  0x55   :  { %1150 = vmatpush.bf16.msra.mxu3 %v2262_v23  ;;  %v2198_v8 = vor.u32 %v2571_v5, %v2195_v7  ;;  %v2515_v9 = vld [vmem:[#allocation8 + $0x164] sm:$0xf]  ;;  %v1971_v10 = vld [vmem:[#allocation8 + $0x170] sm:$0xf0]  ;;  %v1882_v5 = vor.u32 %v2494_v59, %v1881_v58  ;;  %v2281_v7 = vld [vmem:[#allocation8 + $0x3c8] sm:$0xf] }
  0x56   :  { %1109 = vmatpush.bf16.msrb.mxu0 %v1862_v15  ;;  %v1974_v11 = vor.u32 %v2515_v9, %v1971_v10  ;;  %v2535_v12 = vld [vmem:[#allocation8 + $0x204] sm:$0xf]  ;;  %v2051_v13 = vld [vmem:[#allocation8 + $0x210] sm:$0xf0]  ;;  %v1865_v9 = vld [vmem:[#allocation8 + $0x88] sm:$0xf] }
  0x57   :  { %1121 = vmatpush.bf16.msrb.mxu1 %v2022_v43  ;;  %v2567_v14 = vld [vmem:[#allocation8 + $0x304] sm:$0xf]  ;;  %v2054_v15 = vor.u32 %v2535_v12, %v2051_v13  ;;  %v2179_v16 = vld [vmem:[#allocation8 + $0x310] sm:$0xf0]  ;;  %v2490_v10 = vld [vmem:[#allocation8 + $0x94] sm:$0xf0] }
  0x58   :  { %1137 = vmatpush.bf16.msra.mxu2 %v2118_v35  ;;  %v2182_v17 = vor.u32 %v2567_v14, %v2179_v16  ;;  %v2511_v18 = vld [vmem:[#allocation8 + $0x144] sm:$0xf]  ;;  %v1955_v19 = vld [vmem:[#allocation8 + $0x150] sm:$0xf0]  ;;  %v2137_v14 = vld [vmem:[#allocation8 + $0x2a8] sm:$0xf]  ;;  %v1866_v16 = vor.u32 %v2490_v10, %v1865_v9 }
  0x59   :  { %1151 = vmatpush.bf16.msra.mxu3 %v2246_v37  ;;  %v1958_v20 = vor.u32 %v2511_v18, %v1955_v19  ;;  %v2507_v21 = vld [vmem:[#allocation8 + $0x124] sm:$0xf]  ;;  %v1939_v22 = vld [vmem:[#allocation8 + $0x130] sm:$0xf0]  ;;  %v1913_v37 = vld [vmem:[#allocation8 + $0xe8] sm:$0xf] }
  0x5a   :  { %1110 = vmatpush.bf16.msrb.mxu0 %v1846_v29  ;;  %v1942_v23 = vor.u32 %v2507_v21, %v1939_v22  ;;  %v2503_v25 = vld [vmem:[#allocation8 + $0x104] sm:$0xf]  ;;  %v1923_v26 = vld [vmem:[#allocation8 + $0x110] sm:$0xf0]  ;;  %v1914_v43 = vor.u32 %v2502_v38, %v1913_v37  ;;  %v2265_v18 = vld [vmem:[#allocation8 + $0x3a8] sm:$0xf] }
  0x5b   :  { %1122 = vmatpush.bf16.msrb.mxu1 %v2006_v54  ;;  %v1926_v27 = vor.u32 %v2503_v25, %v1923_v26  ;;  %v2590_v19 = vld [vmem:[#allocation8 + $0x3b4] sm:$0xf0]  ;;  %v1849_v21 = vld [vmem:[#allocation8 + $0x68] sm:$0xf] }
  0x5c   :  { %1138 = vmatpush.bf16.msra.mxu2 %v2102_v46  ;;  %v2486_v22 = vld [vmem:[#allocation8 + $0x74] sm:$0xf0]  ;;  %v1833_v37 = vld [vmem:[#allocation8 + $0x48] sm:$0xf] }
  0x5d   :  { %1152 = vmatpush.bf16.msra.mxu3 %v2230_v48  ;;  %v2534_v25 = vld [vmem:[#allocation8 + $0x1f4] sm:$0xf0]  ;;  %v2233_v45 = vld [vmem:[#allocation8 + $0x368] sm:$0xf] }
  0x5e   :  { %1111 = vmatpush.bf16.msrb.mxu0 %v1830_v41  ;;  %v2482_v38 = vld [vmem:[#allocation8 + $0x54] sm:$0xf0]  ;;  %v2201_v9 = vld [vmem:[#allocation8 + $0x328] sm:$0xf] }
  0x5f   :  { %1123 = vmatpush.bf16.msrb.mxu1 %v1990_v2  ;;  %v2153_v2 = vld [vmem:[#allocation8 + $0x2c8] sm:$0xf]  ;;  %v2578_v58 = vld [vmem:[#allocation8 + $0x354] sm:$0xf0] }
  0x60   :  { %1139 = vmatpush.bf16.msra.mxu2 %v2086_v57  ;;  %v2598_v57 = vld [vmem:[#allocation8 + $0x3f4] sm:$0xf0] }
  0x61   :  { %1153 = vmatpush.bf16.msra.mxu3 %v2214_v60  ;;  %v2298_v1 = vor.u32 %v2598_v57, %v2297_v56  ;;  %v2546_v56 = vld [vmem:[#allocation8 + $0x254] sm:$0xf0]  ;;  %v2217_v57 = vld [vmem:[#allocation8 + $0x348] sm:$0xf] }
  0x62   :  { %1112 = vmatpush.bf16.msrb.mxu0 %v1814_v52  ;;  %v2574_v10 = vld [vmem:[#allocation8 + $0x334] sm:$0xf0] }
  0x63   :  { %1124 = vmatpush.bf16.msrb.mxu1 %v1974_v11 }
  0x64   :  { %1140 = vmatpush.bf16.msra.mxu2 %v2070_v6  ;;  %v2562_v6 = vld [vmem:[#allocation8 + $0x2d4] sm:$0xf0] }
  0x65   :  { %1154 = vmatpush.bf16.msra.mxu3 %v2198_v8  ;;  %v2594_v8 = vld [vmem:[#allocation8 + $0x3d4] sm:$0xf0]  ;;  %v2154_v12 = vor.u32 %v2562_v6, %v2153_v2  ;;  %v2218_v2 = vor.u32 %v2578_v58, %v2217_v57  ;;  %v1915_v6 = vld [vmem:[#allocation8 + $0xf8] sm:$0xf0]  ;;  %v1929_v58 = vld [vmem:[#allocation8 + $0x108] sm:$0xf] }
  0x66   :  { %1113 = vmatpush.bf16.msrb.mxu0 %v1798_v0  ;;  %v2170_v0 = vor.u32 %v2566_v50, %v2169_v49  ;;  %v2282_v13 = vor.u32 %v2594_v8, %v2281_v7  ;;  %v1817_v49 = vld [vmem:[#allocation8 + $0x28] sm:$0xf]  ;;  %v2478_v50 = vld [vmem:[#allocation8 + $0x34] sm:$0xf0] }
  0x67   :  { %1125 = vmatpush.bf16.msrb.mxu1 %v1958_v20  ;;  %v1818_v59 = vor.u32 %v2478_v50, %v1817_v49  ;;  %v2073_v7 = vld [vmem:[#allocation8 + $0x228] sm:$0xf]  ;;  %v2542_v8 = vld [vmem:[#allocation8 + $0x234] sm:$0xf0]  ;;  %v1867_v49 = vld [vmem:[#allocation8 + $0x98] sm:$0xf0] }
  0x68   :  { %1141 = vmatpush.bf16.msra.mxu2 %v2054_v15 }
  0x69   :  { %1155 = vmatpush.bf16.msra.mxu3 %v2182_v17  ;;  %v2558_v17 = vld [vmem:[#allocation8 + $0x2b4] sm:$0xf0] }
  0x6a   :  { %v2138_v28 = vor.u32 %v2558_v17, %v2137_v14  ;;  %v1977_v14 = vld [vmem:[#allocation8 + $0x168] sm:$0xf]  ;;  %v2074_v17 = vor.u32 %v2542_v8, %v2073_v7  ;;  %v2584_v7 = vld [vmem:[#allocation8 + $0x38c] sm:$0xf]  ;;  %v2251_v8 = vld [vmem:[#allocation8 + $0x398] sm:$0xf0] }
  0x6b   :  { %1126 = vmatpush.bf16.msrb.mxu1 %v1942_v23  ;;  %v2041_v23 = vld [vmem:[#allocation8 + $0x1e8] sm:$0xf] }
  0x6f   :  { %1127 = vmatpush.bf16.msrb.mxu1 %v1926_v27 }
  0xa7   :  { %v213_v29 = vpop.f32.mrf.mxu1 }
  0xa8   :  { %v214_v31 = vadd.f32 %v213_v29, %v152_v30  ;;  %v2266_v29 = vor.u32 %v2590_v19, %v2265_v18  ;;  %v2202_v18 = vor.u32 %v2574_v10, %v2201_v9  ;;  %v1899_v19 = vld [vmem:[#allocation8 + $0xd8] sm:$0xf0] }
  0xaa   :  { %v260_v40 = vmax.f32 %v214_v31, 0.0  ;;  %v2554_v31 = vld [vmem:[#allocation8 + $0x294] sm:$0xf0] }
  0xae   :  { %v241_v32 = vpop.f32.mrf.mxu2 }
  0xaf   :  { %v255_v33 = vpop.f32.mrf.mxu3  ;;  %v215_v35 = vpop.f32.mrf.mxu1  ;;  %v242_v46 = vadd.f32 %v241_v32, %v154_v39  ;;  %v2249_v32 = vld [vmem:[#allocation8 + $0x388] sm:$0xf] }
  0xb0   :  { %v216_v36 = vadd.f32 %v215_v35, %v152_v30  ;;  %v256_v42 = vadd.f32 %v255_v33, %v155_v34  ;;  %v2121_v30 = vld [vmem:[#allocation8 + $0x288] sm:$0xf]  ;;  %v2586_v33 = vld [vmem:[#allocation8 + $0x394] sm:$0xf0]  ;;  %v1850_v35 = vor.u32 %v2486_v22, %v1849_v21 }
  0xb1   :  { %v262_v60 = vmax.f32 %v242_v46, 0.0  ;;  %v2582_v46 = vld [vmem:[#allocation8 + $0x374] sm:$0xf0]  ;;  %v2185_v22 = vld [vmem:[#allocation8 + $0x308] sm:$0xf] }
  0xb2   :  { %v264_v41 = vmax.f32 %v216_v36, 0.0  ;;  %v263_v51 = vmax.f32 %v256_v42, 0.0  ;;  %v2042_v36 = vor.u32 %v2534_v25, %v2041_v23  ;;  %v2250_v42 = vor.u32 %v2586_v33, %v2249_v32  ;;  %v2538_v21 = vld [vmem:[#allocation8 + $0x214] sm:$0xf0]  ;;  %v2564_v25 = vld [vmem:[#allocation8 + $0x2ec] sm:$0xf] }
  0xb3   :  { %v2570_v23 = vld [vmem:[#allocation8 + $0x314] sm:$0xf0] }
  0xb4   :  { %v2974_v24 = vpack.c.bf16 %v264_v41, %v260_v40  ;;  %v2530_v40 = vld [vmem:[#allocation8 + $0x1d4] sm:$0xf0]  ;;  %v2122_v41 = vor.u32 %v2554_v31, %v2121_v30  ;;  %v1961_v31 = vld [vmem:[#allocation8 + $0x148] sm:$0xf] }
  0xb5   :  { %v2514_v32 = vld [vmem:[#allocation8 + $0x154] sm:$0xf0] }
  0xb6   :  { %v243_v47 = vpop.f32.mrf.mxu2  ;;  %1058 = vmatmul.bf16.vlgmr.msra.gmra.mxu0 %v2974_v24 }
  0xb7   :  { %v257_v48 = vpop.f32.mrf.mxu3  ;;  %v244_v52 = vadd.f32 %v243_v47, %v154_v39  ;;  %1162 = vmatpush.bf16.msra.mxu0 %v1914_v43  ;;  %v227_v54 = vpop.f32.mrf.mxu1  ;;  %v2025_v39 = vld [vmem:[#allocation8 + $0x1c8] sm:$0xf]  ;;  %v1834_v47 = vor.u32 %v2482_v38, %v1833_v37  ;;  %v1883_v37 = vld [vmem:[#allocation8 + $0xb8] sm:$0xf0] }
  0xb8   :  { %v258_v53 = vadd.f32 %v257_v48, %v155_v34  ;;  %v228_v11 = vadd.f32 %v227_v54, %v153_v63  ;;  %v2105_v43 = vld [vmem:[#allocation8 + $0x268] sm:$0xf]  ;;  %v2026_v48 = vor.u32 %v2530_v40, %v2025_v39  ;;  %v2234_v54 = vor.u32 %v2582_v46, %v2233_v45  ;;  %v2560_v40 = vld [vmem:[#allocation8 + $0x2cc] sm:$0xf] }
  0xb9   :  { %v266_v61 = vmax.f32 %v244_v52, 0.0  ;;  %v2526_v52 = vld [vmem:[#allocation8 + $0x1b4] sm:$0xf0]  ;;  %v1945_v46 = vld [vmem:[#allocation8 + $0x128] sm:$0xf] }
  0xba   :  { %v267_v62 = vmax.f32 %v258_v53, 0.0  ;;  %v261_v26 = vmax.f32 %v228_v11, 0.0  ;;  %v2106_v53 = vor.u32 %v2550_v44, %v2105_v43  ;;  %v2592_v43 = vld [vmem:[#allocation8 + $0x3cc] sm:$0xf]  ;;  %v2283_v44 = vld [vmem:[#allocation8 + $0x3d8] sm:$0xf0] }
  0xbb   :  { %v2978_v3 = vpack.c.bf16 %v266_v61, %v262_v60  ;;  %1163 = vmatpush.bf16.msra.mxu0 %v1898_v55  ;;  %v2089_v55 = vld [vmem:[#allocation8 + $0x248] sm:$0xf] }
  0xbc   :  { %v2980_v4 = vpack.c.bf16 %v267_v62, %v263_v51  ;;  %v2009_v51 = vld [vmem:[#allocation8 + $0x1a8] sm:$0xf]  ;;  %v2474_v62 = vld [vmem:[#allocation8 + $0x14] sm:$0xf0] }
  0xbd   :  { %1086 = vmatmul.bf16.vlgmr.msrb.gmra.mxu2 %v2978_v3  ;;  %v2010_v60 = vor.u32 %v2526_v52, %v2009_v51  ;;  %v1801_v61 = vld [vmem:[#allocation8 + $0x8] sm:$0xf]  ;;  %v2286_v51 = vor.u32 %v2592_v43, %v2283_v44  ;;  %v2556_v52 = vld [vmem:[#allocation8 + $0x2ac] sm:$0xf]  ;;  %v2075_v44 = vld [vmem:[#allocation8 + $0x238] sm:$0xf0] }
  0xbe   :  { %1100 = vmatmul.bf16.vlgmr.msrb.gmra.mxu3 %v2980_v4  ;;  %1190 = vmatpush.bf16.msrb.mxu2 %v2170_v0  ;;  %v2522_v0 = vld [vmem:[#allocation8 + $0x194] sm:$0xf0]  ;;  %v1802_v11 = vor.u32 %v2474_v62, %v1801_v61  ;;  %v1851_v61 = vld [vmem:[#allocation8 + $0x78] sm:$0xf0]  ;;  %v2532_v62 = vld [vmem:[#allocation8 + $0x1ec] sm:$0xf] }
  0xbf   :  { %1204 = vmatpush.bf16.msrb.mxu3 %v2298_v1  ;;  %1164 = vmatpush.bf16.msra.mxu0 %v1882_v5  ;;  %v229_v15 = vpop.f32.mrf.mxu1  ;;  %v2090_v1 = vor.u32 %v2546_v56, %v2089_v55  ;;  %v2500_v5 = vld [vmem:[#allocation8 + $0xec] sm:$0xf]  ;;  %v2267_v56 = vld [vmem:[#allocation8 + $0x3b8] sm:$0xf0] }
  0xc0   :  { %v230_v20 = vadd.f32 %v229_v15, %v153_v63  ;;  %v1993_v63 = vld [vmem:[#allocation8 + $0x188] sm:$0xf]  ;;  %v2518_v15 = vld [vmem:[#allocation8 + $0x174] sm:$0xf0]  ;;  %v2588_v55 = vld [vmem:[#allocation8 + $0x3ac] sm:$0xf] }
  0xc1   :  { %v2540_v43 = vld [vmem:[#allocation8 + $0x22c] sm:$0xf] }
  0xc2   :  { %v265_v27 = vmax.f32 %v230_v20, 0.0  ;;  %1191 = vmatpush.bf16.msrb.mxu2 %v2154_v12  ;;  %v1994_v12 = vor.u32 %v2522_v0, %v1993_v63  ;;  %v2057_v20 = vld [vmem:[#allocation8 + $0x208] sm:$0xf]  ;;  %v2043_v63 = vld [vmem:[#allocation8 + $0x1f8] sm:$0xf0] }
  0xc3   :  { %1205 = vmatpush.bf16.msrb.mxu3 %v2282_v13  ;;  %1165 = vmatpush.bf16.msra.mxu0 %v1866_v16  ;;  %v1918_v13 = vor.u32 %v2500_v5, %v1915_v6  ;;  %v2496_v16 = vld [vmem:[#allocation8 + $0xcc] sm:$0xf]  ;;  %v2058_v33 = vor.u32 %v2538_v21, %v2057_v20  ;;  %v2123_v6 = vld [vmem:[#allocation8 + $0x298] sm:$0xf0]  ;;  %v2046_v10 = vor.u32 %v2532_v62, %v2043_v63 }
  0xc4   :  { %v2984_v34 = vpack.c.bf16 %v265_v27, %v261_v26  ;;  %v1978_v26 = vor.u32 %v2518_v15, %v1977_v14  ;;  %v2171_v27 = vld [vmem:[#allocation8 + $0x2f8] sm:$0xf0]  ;;  %v1902_v30 = vor.u32 %v2496_v16, %v1899_v19  ;;  %v2254_v16 = vor.u32 %v2584_v7, %v2251_v8  ;;  %v2580_v19 = vld [vmem:[#allocation8 + $0x36c] sm:$0xf]  ;;  %v2605_v7 = vld [vmem:[#allocation11 + $0x30] sm:$0xff] }
  0xc5   :  { %v2174_v38 = vor.u32 %v2564_v25, %v2171_v27  ;;  %v2027_v14 = vld [vmem:[#allocation8 + $0x1d8] sm:$0xf0]  ;;  %v2508_v63 = vld [vmem:[#allocation8 + $0x12c] sm:$0xf] }
  0xc6   :  { %1192 = vmatpush.bf16.msrb.mxu2 %v2138_v28  ;;  %1072 = vmatmul.bf16.vlgmr.msra.gmra.mxu1 %v2984_v34  ;;  %v2596_v28 = vld [vmem:[#allocation8 + $0x3ec] sm:$0xf]  ;;  %v2235_v20 = vld [vmem:[#allocation8 + $0x378] sm:$0xf0] }
  0xc7   :  { %1206 = vmatpush.bf16.msrb.mxu3 %v2266_v29  ;;  %1114 = vmatmul.bf16.vlgmr.msrb.gmra.mxu0 %v2974_v24  ;;  %v2299_v29 = vld [vmem:[#allocation8 + $0x3f8] sm:$0xf0]  ;;  %v2604_v8 = vld [vmem:[#allocation11 + $0x28] sm:$0xff] }
  0xc8   :  { %1166 = vmatpush.bf16.msra.mxu0 %v1850_v35  ;;  %1176 = vmatpush.bf16.msra.mxu1 %v2042_v36  ;;  %v2186_v35 = vor.u32 %v2570_v23, %v2185_v22  ;;  %v2492_v36 = vld [vmem:[#allocation8 + $0xac] sm:$0xf]  ;;  %v2302_v39 = vor.u32 %v2596_v28, %v2299_v29  ;;  %v1819_v25 = vld [vmem:[#allocation8 + $0x38] sm:$0xf0]  ;;  %v2238_v29 = vor.u32 %v2580_v19, %v2235_v20  ;;  %v2621_v19 = vld [vmem:[#allocation11 + $0xb0] sm:$0xff] }
  0xc9   :  { %v1886_v45 = vor.u32 %v2492_v36, %v1883_v37  ;;  %v2476_v23 = vld [vmem:[#allocation8 + $0x2c] sm:$0xf]  ;;  %v2011_v27 = vld [vmem:[#allocation8 + $0x1b8] sm:$0xf0]  ;;  %v2999_v20 = vld [vmem:[#allocation10] sm:$0xf] }
  0xca   :  { %1193 = vmatpush.bf16.msrb.mxu2 %v2122_v41  ;;  %v1962_v41 = vor.u32 %v2514_v32, %v1961_v31  ;;  %v2091_v31 = vld [vmem:[#allocation8 + $0x258] sm:$0xf0]  ;;  %v2576_v32 = vld [vmem:[#allocation8 + $0x34c] sm:$0xf] }
  0xcb   :  { %1207 = vmatpush.bf16.msrb.mxu3 %v2250_v42  ;;  %v2155_v42 = vld [vmem:[#allocation8 + $0x2d8] sm:$0xf0]  ;;  %v2472_v37 = vld [vmem:[#allocation8 + $0xc] sm:$0xf] }
  0xcc   :  { %1167 = vmatpush.bf16.msra.mxu0 %v1834_v47  ;;  %1177 = vmatpush.bf16.msra.mxu1 %v2026_v48  ;;  %v2510_v47 = vld [vmem:[#allocation8 + $0x134] sm:$0xf0]  ;;  %v2488_v48 = vld [vmem:[#allocation8 + $0x8c] sm:$0xf]  ;;  %v2158_v50 = vor.u32 %v2560_v40, %v2155_v42  ;;  %v1995_v40 = vld [vmem:[#allocation8 + $0x198] sm:$0xf0] }
  0xcd   :  { %1142 = vmatmul.bf16.vlgmr.msra.gmra.mxu2 %v2978_v3  ;;  %v1870_v57 = vor.u32 %v2488_v48, %v1867_v49  ;;  %v2516_v49 = vld [vmem:[#allocation8 + $0x16c] sm:$0xf] }
  0xce   :  { %1156 = vmatmul.bf16.vlgmr.msra.gmra.mxu3 %v2980_v4  ;;  %1194 = vmatpush.bf16.msrb.mxu2 %v2106_v53  ;;  %v1946_v53 = vor.u32 %v2510_v47, %v1945_v46  ;;  %v2203_v46 = vld [vmem:[#allocation8 + $0x338] sm:$0xf0] }
  0xcf   :  { %1208 = vmatpush.bf16.msrb.mxu3 %v2234_v54  ;;  %v2139_v54 = vld [vmem:[#allocation8 + $0x2b8] sm:$0xf0] }
  0xd0   :  { %1168 = vmatpush.bf16.msra.mxu0 %v1818_v59  ;;  %1178 = vmatpush.bf16.msra.mxu1 %v2010_v60  ;;  %v2506_v59 = vld [vmem:[#allocation8 + $0x114] sm:$0xf0]  ;;  %v2484_v60 = vld [vmem:[#allocation8 + $0x6c] sm:$0xf]  ;;  %v2142_v0 = vor.u32 %v2556_v52, %v2139_v54  ;;  %v2059_v54 = vld [vmem:[#allocation8 + $0x218] sm:$0xf0] }
  0xd1   :  { %v1930_v5 = vor.u32 %v2506_v59, %v1929_v58  ;;  %v1854_v9 = vor.u32 %v2484_v60, %v1851_v61  ;;  %v2512_v58 = vld [vmem:[#allocation8 + $0x14c] sm:$0xf]  ;;  %v1963_v59 = vld [vmem:[#allocation8 + $0x158] sm:$0xf0] }
  0xd2   :  { %1195 = vmatpush.bf16.msrb.mxu2 %v2090_v1  ;;  %v2270_v1 = vor.u32 %v2588_v55, %v2267_v56  ;;  %v2568_v55 = vld [vmem:[#allocation8 + $0x30c] sm:$0xf]  ;;  %v2187_v56 = vld [vmem:[#allocation8 + $0x318] sm:$0xf0]  ;;  %v1966_v62 = vor.u32 %v2512_v58, %v1963_v59  ;;  %v2629_v59 = vld [vmem:[#allocation11 + $0xf0] sm:$0xff] }
  0xd3   :  { %1209 = vmatpush.bf16.msrb.mxu3 %v2218_v2  ;;  %v2552_v2 = vld [vmem:[#allocation8 + $0x28c] sm:$0xf]  ;;  %v2190_v61 = vor.u32 %v2568_v55, %v2187_v56 }
  0xd4   :  { %1169 = vmatpush.bf16.msra.mxu0 %v1802_v11  ;;  %1179 = vmatpush.bf16.msra.mxu1 %v1994_v12  ;;  %v2480_v11 = vld [vmem:[#allocation8 + $0x4c] sm:$0xf]  ;;  %v1835_v12 = vld [vmem:[#allocation8 + $0x58] sm:$0xf0]  ;;  %v2126_v15 = vor.u32 %v2552_v2, %v2123_v6 }
  0xd5   :  { %v1838_v21 = vor.u32 %v2480_v11, %v1835_v12  ;;  %v2504_v2 = vld [vmem:[#allocation8 + $0x10c] sm:$0xf]  ;;  %v2614_v11 = vld [vmem:[#allocation11 + $0x78] sm:$0xff] }
  0xd6   :  { %1196 = vmatpush.bf16.msrb.mxu2 %v2074_v17  ;;  %1128 = vmatmul.bf16.vlgmr.msrb.gmra.mxu1 %v2984_v34  ;;  %v2548_v17 = vld [vmem:[#allocation8 + $0x26c] sm:$0xf] }
  0xd7   :  { %1210 = vmatpush.bf16.msrb.mxu3 %v2202_v18  ;;  %1170 = vmatmul.bf16.vlgmr.msra.gmra.mxu0 %v2974_v24  ;;  %v2107_v18 = vld [vmem:[#allocation8 + $0x278] sm:$0xf0]  ;;  %v2600_v12 = vld [vmem:[#allocation11 + $0x8] sm:$0xff] }
  0xd8   :  { %1218 = vmatpush.bf16.msrb.mxu0 %v1918_v13  ;;  %1180 = vmatpush.bf16.msra.mxu1 %v1978_v26  ;;  %v2528_v13 = vld [vmem:[#allocation8 + $0x1cc] sm:$0xf]  ;;  %v2110_v28 = vor.u32 %v2548_v17, %v2107_v18  ;;  %v2622_v17 = vld [vmem:[#allocation11 + $0xb8] sm:$0xff]  ;;  %v2609_v18 = vld [vmem:[#allocation11 + $0x50] sm:$0xff] }
  0xd9   :  { %v2030_v22 = vor.u32 %v2528_v13, %v2027_v14  ;;  %v2524_v26 = vld [vmem:[#allocation8 + $0x1ac] sm:$0xf]  ;;  %v2611_v14 = vld [vmem:[#allocation11 + $0x60] sm:$0xff] }
  0xda   :  { %1197 = vmatpush.bf16.msrb.mxu2 %v2058_v33  ;;  %v2219_v33 = vld [vmem:[#allocation8 + $0x358] sm:$0xf0]  ;;  %v2014_v36 = vor.u32 %v2524_v26, %v2011_v27  ;;  %v2612_v13 = vld [vmem:[#allocation11 + $0x68] sm:$0xff]  ;;  %v402_v26 = vperm.slane %v2999_v20, 0 }
  0xdb   :  { %1211 = vmatpush.bf16.msrb.mxu3 %v2186_v35  ;;  %v1822_v35 = vor.u32 %v2476_v23, %v1819_v25  ;;  %v2222_v42 = vor.u32 %v2576_v32, %v2219_v33  ;;  %v2618_v33 = vld [vmem:[#allocation11 + $0x98] sm:$0xff] }
  0xdc   :  { %1219 = vmatpush.bf16.msrb.mxu0 %v1902_v30  ;;  %1181 = vmatpush.bf16.msra.mxu1 %v1962_v41  ;;  %v2544_v30 = vld [vmem:[#allocation8 + $0x24c] sm:$0xf] }
  0xdd   :  { %1198 = vmatmul.bf16.vlgmr.msrb.gmra.mxu2 %v2978_v3  ;;  %v2094_v41 = vor.u32 %v2544_v30, %v2091_v31 }
  0xde   :  { %1246 = vmatpush.bf16.msra.mxu2 %v2174_v38  ;;  %1212 = vmatmul.bf16.vlgmr.msrb.gmra.mxu3 %v2980_v4  ;;  %v1803_v38 = vld [vmem:[#allocation8 + $0x18] sm:$0xf0] }
  0xdf   :  { %1260 = vmatpush.bf16.msra.mxu3 %v2302_v39  ;;  %v2520_v39 = vld [vmem:[#allocation8 + $0x18c] sm:$0xf]  ;;  %v1806_v47 = vor.u32 %v2472_v37, %v1803_v38 }
  0xe0   :  { %1220 = vmatpush.bf16.msrb.mxu0 %v1886_v45  ;;  %1182 = vmatpush.bf16.msra.mxu1 %v1946_v53  ;;  %v2572_v45 = vld [vmem:[#allocation8 + $0x32c] sm:$0xf]  ;;  %v1998_v48 = vor.u32 %v2520_v39, %v1995_v40  ;;  %v2617_v40 = vld [vmem:[#allocation11 + $0x90] sm:$0xff] }
  0xe1   :  { %v2206_v52 = vor.u32 %v2572_v45, %v2203_v46  ;;  %v2536_v53 = vld [vmem:[#allocation8 + $0x20c] sm:$0xf]  ;;  %v403_v46 = vperm.slane %v2999_v20, 1 }
  0xe2   :  { %1247 = vmatpush.bf16.msra.mxu2 %v2158_v50  ;;  %v1979_v50 = vld [vmem:[#allocation8 + $0x178] sm:$0xf0]  ;;  %v2062_v60 = vor.u32 %v2536_v53, %v2059_v54  ;;  %v2616_v45 = vld [vmem:[#allocation11 + $0x88] sm:$0xff] }
  0xe3   :  { %1261 = vmatpush.bf16.msra.mxu3 %v2286_v51  ;;  %v2078_v51 = vor.u32 %v2540_v43, %v2075_v44  ;;  %v2630_v53 = vld [vmem:[#allocation11 + $0xf8] sm:$0xff] }
  0xe4   :  { %1221 = vmatpush.bf16.msrb.mxu0 %v1870_v57  ;;  %1183 = vmatpush.bf16.msra.mxu1 %v1930_v5  ;;  %v1982_v57 = vor.u32 %v2516_v49, %v1979_v50  ;;  %v1931_v5 = vld [vmem:[#allocation8 + $0x118] sm:$0xf0] }
  0xe5   :  { %v1934_v6 = vor.u32 %v2504_v2, %v1931_v5 }
  0xe6   :  { %1248 = vmatpush.bf16.msra.mxu2 %v2142_v0  ;;  %v1947_v0 = vld [vmem:[#allocation8 + $0x138] sm:$0xf0] }
  0xe7   :  { %1262 = vmatpush.bf16.msra.mxu3 %v2270_v1  ;;  %1184 = vmatmul.bf16.vlgmr.msra.gmra.mxu1 %v2984_v34  ;;  %v1950_v1 = vor.u32 %v2508_v63, %v1947_v0  ;;  %v2628_v63 = vld [vmem:[#allocation11 + $0xe8] sm:$0xff] }
  0xe8   :  { %1222 = vmatpush.bf16.msrb.mxu0 %v1854_v9  ;;  %1232 = vmatpush.bf16.msrb.mxu1 %v2046_v10  ;;  %v2603_v9 = vld [vmem:[#allocation11 + $0x20] sm:$0xff]  ;;  %v2602_v10 = vld [vmem:[#allocation11 + $0x18] sm:$0xff] }
  0xea   :  { %1249 = vmatpush.bf16.msra.mxu2 %v2126_v15 }
  0xeb   :  { %1263 = vmatpush.bf16.msra.mxu3 %v2254_v16  ;;  %v2610_v16 = vld [vmem:[#allocation11 + $0x58] sm:$0xff] }
  0xec   :  { %1223 = vmatpush.bf16.msrb.mxu0 %v1838_v21  ;;  %1233 = vmatpush.bf16.msrb.mxu1 %v2030_v22  ;;  %v2608_v21 = vld [vmem:[#allocation11 + $0x48] sm:$0xff] }
  0xed   :  { %v2620_v22 = vld [vmem:[#allocation11 + $0xa8] sm:$0xff] }
  0xee   :  { %1250 = vmatpush.bf16.msra.mxu2 %v2110_v28  ;;  %v2607_v28 = vld [vmem:[#allocation11 + $0x40] sm:$0xff] }
  0xef   :  { %1264 = vmatpush.bf16.msra.mxu3 %v2238_v29  ;;  %v2619_v29 = vld [vmem:[#allocation11 + $0xa0] sm:$0xff] }
  0xf0   :  { %1224 = vmatpush.bf16.msrb.mxu0 %v1822_v35  ;;  %1234 = vmatpush.bf16.msrb.mxu1 %v2014_v36 }
  0xf2   :  { %1251 = vmatpush.bf16.msra.mxu2 %v2094_v41 }
  0xf3   :  { %1265 = vmatpush.bf16.msra.mxu3 %v2222_v42 }
  0xf4   :  { %1225 = vmatpush.bf16.msrb.mxu0 %v1806_v47  ;;  %1235 = vmatpush.bf16.msrb.mxu1 %v1998_v48 }
  0xf6   :  { %1252 = vmatpush.bf16.msra.mxu2 %v2078_v51 }
  0xf7   :  { %1266 = vmatpush.bf16.msra.mxu3 %v2206_v52  ;;  %1226 = vmatmul.bf16.vlgmr.msrb.gmra.mxu0 %v2974_v24  ;;  %v2606_v24 = vld [vmem:[#allocation11 + $0x38] sm:$0xff]  ;;  %v2615_v52 = vld [vmem:[#allocation11 + $0x80] sm:$0xff] }
  0xf8   :  { %1236 = vmatpush.bf16.msrb.mxu1 %v1982_v57  ;;  %1546 = vmatpush.bf16.msra.mxu0 %v2606_v24 }
  0xfa   :  { %1253 = vmatpush.bf16.msra.mxu2 %v2062_v60 }
  0xfb   :  { %1267 = vmatpush.bf16.msra.mxu3 %v2190_v61 }
  0xfc   :  { %1237 = vmatpush.bf16.msrb.mxu1 %v1966_v62  ;;  %1547 = vmatpush.bf16.msra.mxu0 %v2605_v7  ;;  %v2627_v7 = vld [vmem:[#allocation11 + $0xe0] sm:$0xff] }
  0xfd   :  { %1254 = vmatmul.bf16.vlgmr.msra.gmra.mxu2 %v2978_v3  ;;  %v2601_v3 = vld [vmem:[#allocation11 + $0x10] sm:$0xff] }
  0xfe   :  { %1268 = vmatmul.bf16.vlgmr.msra.gmra.mxu3 %v2980_v4  ;;  %v2613_v4 = vld [vmem:[#allocation11 + $0x70] sm:$0xff]  ;;  %1574 = vmatpush.bf16.msrb.mxu2 %v2622_v17 }
  0xff   :  { %1588 = vmatpush.bf16.msrb.mxu3 %v2630_v53 }
 0x100   :  { %1238 = vmatpush.bf16.msrb.mxu1 %v1950_v1  ;;  %1548 = vmatpush.bf16.msra.mxu0 %v2604_v8 }
 0x102   :  { %1575 = vmatpush.bf16.msrb.mxu2 %v2621_v19 }
 0x103   :  { %1589 = vmatpush.bf16.msrb.mxu3 %v2629_v59  ;;  %v2633_v59 = vld [vmem:[#allocation13 + $0x10] sm:$0xff] }
 0x104   :  { %1239 = vmatpush.bf16.msrb.mxu1 %v1934_v6  ;;  %1549 = vmatpush.bf16.msra.mxu0 %v2603_v9  ;;  %v404_v9 = vperm.slane %v2999_v20, 2 }
 0x106   :  { %1576 = vmatpush.bf16.msrb.mxu2 %v2620_v22 }
 0x107   :  { %1240 = vmatmul.bf16.vlgmr.msrb.gmra.mxu1 %v2984_v34  ;;  %v2599_v34 = vld [vmem:[#allocation11] sm:$0xff]  ;;  %1590 = vmatpush.bf16.msrb.mxu3 %v2628_v63 }
 0x108   :  { %1550 = vmatpush.bf16.msra.mxu0 %v2602_v10  ;;  %1560 = vmatpush.bf16.msra.mxu1 %v2614_v11 }
 0x10a   :  { %1577 = vmatpush.bf16.msrb.mxu2 %v2619_v29 }
 0x10b   :  { %1591 = vmatpush.bf16.msrb.mxu3 %v2627_v7 }
 0x10c   :  { %1551 = vmatpush.bf16.msra.mxu0 %v2601_v3  ;;  %1561 = vmatpush.bf16.msra.mxu1 %v2613_v4  ;;  %v2626_v3 = vld [vmem:[#allocation11 + $0xd8] sm:$0xff] }
 0x10e   :  { %1578 = vmatpush.bf16.msrb.mxu2 %v2618_v33 }
 0x10f   :  { %1592 = vmatpush.bf16.msrb.mxu3 %v2626_v3 }
 0x110   :  { %1552 = vmatpush.bf16.msra.mxu0 %v2600_v12  ;;  %1562 = vmatpush.bf16.msra.mxu1 %v2612_v13 }
 0x112   :  { %1579 = vmatpush.bf16.msrb.mxu2 %v2617_v40 }
 0x114   :  { %1553 = vmatpush.bf16.msra.mxu0 %v2599_v34  ;;  %1563 = vmatpush.bf16.msra.mxu1 %v2611_v14 }
 0x116   :  { %1580 = vmatpush.bf16.msrb.mxu2 %v2616_v45 }
 0x118   :  { %1564 = vmatpush.bf16.msra.mxu1 %v2610_v16 }
 0x11a   :  { %1581 = vmatpush.bf16.msrb.mxu2 %v2615_v52 }
 0x11c   :  { %1565 = vmatpush.bf16.msra.mxu1 %v2609_v18  ;;  %v2624_v18 = vld [vmem:[#allocation11 + $0xc8] sm:$0xff] }
 0x120   :  { %1566 = vmatpush.bf16.msra.mxu1 %v2608_v21 }
 0x124   :  { %1567 = vmatpush.bf16.msra.mxu1 %v2607_v28 }
 0x133   :  { %v1059_v15 = vpop.f32.mrf.mxu0 }
 0x134   :  { %v1060_v31 = vadd.f32 %v1059_v15, %v402_v26  ;;  %v2625_v15 = vld [vmem:[#allocation11 + $0xd0] sm:$0xff] }
 0x135   :  { %1593 = vmatpush.bf16.msrb.mxu3 %v2625_v15 }
 0x139   :  { %1594 = vmatpush.bf16.msrb.mxu3 %v2624_v18 }
 0x13b   :  { %v1061_v27 = vpop.f32.mrf.mxu0 }
 0x13c   :  { %v1062_v37 = vadd.f32 %v1061_v27, %v402_v26  ;;  %v2623_v26 = vld [vmem:[#allocation11 + $0xc0] sm:$0xff] }
 0x13d   :  { %1595 = vmatpush.bf16.msrb.mxu3 %v2623_v26 }
 0x140   :  { %v1087_v23 = vpop.f32.mrf.mxu2 }
 0x141   :  { %v1101_v25 = vpop.f32.mrf.mxu3 }
 0x143   :  { %v1073_v30 = vpop.f32.mrf.mxu1 }
 0x144   :  { %v1074_v32 = vadd.f32 %v1073_v30, %v1060_v31  ;;  %v1115_v39 = vpop.f32.mrf.mxu0 }
 0x145   :  { %v1116_v55 = vadd.f32 %v1115_v39, %v403_v46 }
 0x146   :  { %v1088_v38 = vadd.f32 %v1087_v23, %v1074_v32 }
 0x148   :  { %v1089_v35 = vpop.f32.mrf.mxu2  ;;  %v1102_v43 = vadd.f32 %v1101_v25, %v1088_v38 }
 0x149   :  { %v1103_v36 = vpop.f32.mrf.mxu3 }
 0x14a   :  { %v1274_v49 = vmax.f32 %v1102_v43, 0.0 }
 0x14b   :  { %v1075_v41 = vpop.f32.mrf.mxu1 }
 0x14c   :  { %v1076_v42 = vadd.f32 %v1075_v41, %v1062_v37  ;;  %v1117_v57 = vpop.f32.mrf.mxu0 }
 0x14d   :  { %v1118_v60 = vadd.f32 %v1117_v57, %v403_v46  ;;  %v2635_v57 = vld [vmem:[#allocation13 + $0x20] sm:$0xff] }
 0x14e   :  { %v1090_v44 = vadd.f32 %v1089_v35, %v1076_v42 }
 0x150   :  { %v1104_v47 = vadd.f32 %v1103_v36, %v1090_v44  ;;  %v1143_v48 = vpop.f32.mrf.mxu2  ;;  %v405_v36 = vperm.slane %v2999_v20, 3  ;;  %v2638_v20 = vld [vmem:[#allocation13 + $0x38] sm:$0xff] }
 0x151   :  { %v1157_v51 = vpop.f32.mrf.mxu3  ;;  %1673 = vmatpush.bf16.msrb.mxu0 %v2638_v20 }
 0x152   :  { %v1278_v50 = vmax.f32 %v1104_v47, 0.0 }
 0x153   :  { %v1129_v54 = vpop.f32.mrf.mxu1 }
 0x154   :  { %v1282_v56 = vpack.c.bf16 %v1278_v50, %v1274_v49  ;;  %v1130_v58 = vadd.f32 %v1129_v54, %v1116_v55  ;;  %v1171_v6 = vpop.f32.mrf.mxu0  ;;  %v2637_v55 = vld [vmem:[#allocation13 + $0x30] sm:$0xff] }
 0x155   :  { %v1172_v34 = vadd.f32 %v1171_v6, %v404_v9  ;;  %1674 = vmatpush.bf16.msrb.mxu0 %v2637_v55 }
 0x156   :  { %1554 = vmatmul.bf16.vlgmr.msra.gmra.mxu0 %v1282_v56  ;;  %v1144_v61 = vadd.f32 %v1143_v48, %v1130_v58  ;;  %v2636_v56 = vld [vmem:[#allocation13 + $0x28] sm:$0xff]  ;;  %v2634_v58 = vld [vmem:[#allocation13 + $0x18] sm:$0xff] }
 0x158   :  { %v1145_v62 = vpop.f32.mrf.mxu2  ;;  %v1158_v5 = vadd.f32 %v1157_v51, %v1144_v61  ;;  %v2631_v61 = vld [vmem:[#allocation13] sm:$0xff] }
 0x159   :  { %v1159_v1 = vpop.f32.mrf.mxu3  ;;  %1675 = vmatpush.bf16.msrb.mxu0 %v2636_v56 }
 0x15a   :  { %v1275_v10 = vmax.f32 %v1158_v5, 0.0 }
 0x15b   :  { %v1131_v0 = vpop.f32.mrf.mxu1 }
 0x15c   :  { %v1132_v2 = vadd.f32 %v1131_v0, %v1118_v60  ;;  %v1173_v17 = vpop.f32.mrf.mxu0  ;;  %v2632_v60 = vld [vmem:[#allocation13 + $0x8] sm:$0xff] }
 0x15d   :  { %v1174_v19 = vadd.f32 %v1173_v17, %v404_v9  ;;  %1676 = vmatpush.bf16.msrb.mxu0 %v2635_v57 }
 0x15e   :  { %v1146_v24 = vadd.f32 %v1145_v62, %v1132_v2 }
 0x160   :  { %v1160_v8 = vadd.f32 %v1159_v1, %v1146_v24  ;;  %v1199_v12 = vpop.f32.mrf.mxu2  ;;  %v2653_v1 = vld [vmem:[%s3023_s6] ss:$0 sm:$0xff]  ;;  %s2878_s6 = smov [#allocation14]  }
 0x161   :  { %v1213_v14 = vpop.f32.mrf.mxu3  ;;  %1677 = vmatpush.bf16.msrb.mxu0 %v2634_v58 }
 0x162   :  { %v1279_v11 = vmax.f32 %v1160_v8, 0.0 }
 0x164   :  { %v1283_v4 = vpack.c.bf16 %v1279_v11, %v1275_v10  ;;  %v1185_v13 = vpop.f32.mrf.mxu1 }
 0x165   :  { %v1186_v16 = vadd.f32 %v1185_v13, %v1172_v34  ;;  %1678 = vmatpush.bf16.msrb.mxu0 %v2633_v59 }
 0x166   :  { %1568 = vmatmul.bf16.vlgmr.msra.gmra.mxu1 %v1283_v4 }
 0x167   :  { %v1200_v21 = vadd.f32 %v1199_v12, %v1186_v16  ;;  %v2654_v16 = vld [vmem:[%s3025_s8] ss:$0 sm:$0xff]  ;;  %s1737_s8 = sshll.u32 %s2878_s6, 4  ;;  %s1738_s8 = int_to_ptr.vmem [resolvable:$true] %s1737_s8 }
 0x168   :  { %v1201_v25 = vpop.f32.mrf.mxu2 }
 0x169   :  { %v1214_v27 = vadd.f32 %v1213_v14, %v1200_v21  ;;  %v1215_v29 = vpop.f32.mrf.mxu3  ;;  %1679 = vmatpush.bf16.msrb.mxu0 %v2632_v60 }
 0x16b   :  { %v1276_v31 = vmax.f32 %v1214_v27, 0.0 }
 0x16c   :  { %v1187_v22 = vpop.f32.mrf.mxu1 }
 0x16d   :  { %v1188_v23 = vadd.f32 %v1187_v22, %v1174_v19  ;;  %1680 = vmatpush.bf16.msrb.mxu0 %v2631_v61 }
 0x16f   :  { %v1202_v28 = vadd.f32 %v1201_v25, %v1188_v23 }
 0x171   :  { %v1216_v30 = vadd.f32 %v1215_v29, %v1202_v28 }
 0x173   :  { %v1280_v32 = vmax.f32 %v1216_v30, 0.0 }
 0x174   :  { %v1227_v35 = vpop.f32.mrf.mxu0 }
 0x175   :  { %v1284_v33 = vpack.c.bf16 %v1280_v32, %v1276_v31  ;;  %v1228_v39 = vadd.f32 %v1227_v35, %v405_v36 }
 0x177   :  { %1582 = vmatmul.bf16.vlgmr.msrb.gmra.mxu2 %v1284_v33 }
 0x17c   :  { %v1229_v42 = vpop.f32.mrf.mxu0 }
 0x17d   :  { %v1230_v43 = vadd.f32 %v1229_v42, %v405_v36 }
 0x180   :  { %v1255_v37 = vpop.f32.mrf.mxu2 }
 0x181   :  { %v1269_v40 = vpop.f32.mrf.mxu3 }
 0x184   :  { %v1241_v38 = vpop.f32.mrf.mxu1 }
 0x185   :  { %v1242_v41 = vadd.f32 %v1241_v38, %v1228_v39 }
 0x187   :  { %v1256_v44 = vadd.f32 %v1255_v37, %v1242_v41 }
 0x188   :  { %v1257_v47 = vpop.f32.mrf.mxu2 }
 0x189   :  { %v1270_v48 = vadd.f32 %v1269_v40, %v1256_v44  ;;  %v1271_v50 = vpop.f32.mrf.mxu3 }
 0x18b   :  { %v1277_v52 = vmax.f32 %v1270_v48, 0.0 }
 0x18c   :  { %v1243_v45 = vpop.f32.mrf.mxu1 }
 0x18d   :  { %v1244_v46 = vadd.f32 %v1243_v45, %v1230_v43 }
 0x18f   :  { %v1258_v49 = vadd.f32 %v1257_v47, %v1244_v46 }
 0x191   :  { %v1272_v51 = vadd.f32 %v1271_v50, %v1258_v49 }
 0x193   :  { %v1281_v53 = vmax.f32 %v1272_v51, 0.0 }
 0x195   :  { %v1285_v54 = vpack.c.bf16 %v1281_v53, %v1277_v52 }
 0x197   :  { %1596 = vmatmul.bf16.vlgmr.msrb.gmra.mxu3 %v1285_v54 }
 0x1d3   :  { %v1555_v62 = vpop.f32.mrf.mxu0 }
 0x1d4   :  { %v1556_v6 = vadd.f32 %v2653_v1, %v1555_v62 }
 0x1db   :  { %v1557_v2 = vpop.f32.mrf.mxu0 }
 0x1dc   :  { %v1558_v7 = vadd.f32 %v2653_v1, %v1557_v2 }
 0x1e3   :  { %v1569_v63 = vpop.f32.mrf.mxu1 }
 0x1e4   :  { %v1570_v8 = vadd.f32 %v1569_v63, %v1556_v6 }
 0x1eb   :  { %v1571_v24 = vpop.f32.mrf.mxu1 }
 0x1ec   :  { %v1572_v10 = vadd.f32 %v1571_v24, %v1558_v7 }
 0x1fa   :  { %v1583_v0 = vpop.f32.mrf.mxu2 }
 0x1fb   :  { %v1584_v11 = vadd.f32 %v1583_v0, %v1570_v8 }
 0x202   :  { %v1585_v9 = vpop.f32.mrf.mxu2 }
 0x203   :  { %v1586_v3 = vadd.f32 %v1585_v9, %v1572_v10 }
 0x21a   :  { %v1597_v5 = vpop.f32.mrf.mxu3 }
 0x21b   :  { %v1598_v4 = vadd.f32 %v1597_v5, %v1584_v11 }
 0x21d   :  { %v1602_v34 = vmax.f32 %v1598_v4, 0.0 }
 0x222   :  { %v1599_v12 = vpop.f32.mrf.mxu3 }
 0x223   :  { %v1600_v13 = vadd.f32 %v1599_v12, %v1586_v3 }
 0x225   :  { %v1603_v14 = vmax.f32 %v1600_v13, 0.0 }
 0x227   :  { %v1604_v15 = vpack.c.bf16 %v1603_v14, %v1602_v34 }
 0x229   :  { %1681 = vmatmul.bf16.vlgmr.msrb.gmra.mxu0 %v1604_v15 }
 0x2a6   :  { %v1682_v17 = vpop.f32.mrf.mxu0 }
 0x2a7   :  { %v1683_v18 = vadd.f32 %v2654_v16, %v1682_v17 }
 0x2a9   :  { %1687 = vmax.xlane.f32.xlu0 %v1683_v18 }
 0x2ae   :  { %v1684_v19 = vpop.f32.mrf.mxu0 }
 0x2af   :  { %v1685_v21 = vadd.f32 %v2654_v16, %v1684_v19 }
 0x2b1   :  { %1689 = vmax.xlane.f32.xlu0 %v1685_v21 }
 0x31c   :  { %v1688_v22 = vpop.xlane.xlu0 %1687 }
 0x31d   :  { %v1691_v23 = vsub.f32 %v1683_v18, %v1688_v22 }
 0x31f   :  { %v1693_v25 = vmul.f32 1.442695, %v1691_v23 }
 0x321   :  { %2655 = vpow2.f32 %v1693_v25 }
 0x324   :  { %v1690_v26 = vpop.xlane.xlu0 %1689 }
 0x325   :  { %v1692_v27 = vsub.f32 %v1685_v21, %v1690_v26 }
 0x327   :  { %v2656_v28 = vpop.eup %2655  ;;  %v1695_v29 = vmul.f32 1.442695, %v1692_v27 }
 0x328   :  { %1697 = vadd.xlane.f32.xlu1 %v2656_v28 }
 0x329   :  { %2657 = vpow2.f32 %v1695_v29 }
 0x32f   :  { %v2658_v30 = vpop.eup %2657 }
 0x330   :  { %1699 = vadd.xlane.f32.xlu1 %v2658_v30 }
 0x39b   :  { %v1698_v31 = vpop.xlane.xlu1 %1697 }
 0x39c   :  { %2659 = vrcp.f32 %v1698_v31  ;;  %v1712_v37 = vand.u32 2147483648, %v1698_v31  ;;  %v1710_v39 = vand.u32 2147483647, %v1698_v31  ;;  %vm1706_vm2 = vweird.f32 %v1698_v31 }
 0x39e   :  { %v1713_v42 = vor.u32 1.1754944e-38, %v1712_v37  ;;  %vm1711_vm4 = vcmp.eq.f32.partialorder %v1710_v39, 8.507059e+37 }
 0x3a2   :  { %v2660_v32 = vpop.eup %2659 }
 0x3a3   :  { %v1702_v33 = vmul.f32 %v2660_v32, %v1698_v31  ;;  %v1700_v35 = vpop.xlane.xlu1 %1699  ;;  %vm1707_vm1 = vweird.f32 %v2660_v32 }
 0x3a4   :  { %2661 = vrcp.f32 %v1700_v35  ;;  %vm1708_vm3 = vmor %vm1706_vm2, %vm1707_vm1  ;;  %v1727_v48 = vand.u32 2147483648, %v1700_v35  ;;  %v1725_v50 = vand.u32 2147483647, %v1700_v35  ;;  %vm1721_vm6 = vweird.f32 %v1700_v35 }
 0x3a5   :  { %v1703_v36 = vsub.f32 1.0, %v1702_v33 }
 0x3a6   :  { %v1728_v52 = vor.u32 1.1754944e-38, %v1727_v48  ;;  %vm1726_vm8 = vcmp.eq.f32.partialorder %v1725_v50, 8.507059e+37 }
 0x3a7   :  { %v1704_v38 = vmul.f32 %v2660_v32, %v1703_v36 }
 0x3a9   :  { %v1705_v40 = vadd.f32 %v2660_v32, %v1704_v38 }
 0x3aa   :  { %v2662_v41 = vpop.eup %2661 }
 0x3ab   :  { %v1717_v43 = vmul.f32 %v2662_v41, %v1700_v35  ;;  %v1709_v44 = vsel %vm1708_vm3, %v2660_v32, %v1705_v40  ;;  %vm1722_vm5 = vweird.f32 %v2662_v41 }
 0x3ac   :  { %v1714_v45 = vsel %vm1711_vm4, %v1713_v42, %v1709_v44  ;;  %vm1723_vm7 = vmor %vm1721_vm6, %vm1722_vm5 }
 0x3ad   :  { %v1718_v46 = vsub.f32 1.0, %v1717_v43  ;;  %v1715_v47 = vmul.f32 %v2656_v28, %v1714_v45 }
 0x3af   :  { %v1719_v49 = vmul.f32 %v2662_v41, %v1718_v46  ;;  %1731 = vst [vmem:[#allocation14] sm:$0xff] %v1715_v47 }
 0x3b1   :  { %v1720_v51 = vadd.f32 %v2662_v41, %v1719_v49 }
 0x3b3   :  { %v1724_v53 = vsel %vm1723_vm7, %v2662_v41, %v1720_v51 }
 0x3b4   :  { %v1729_v54 = vsel %vm1726_vm8, %v1728_v52, %v1724_v53 }
 0x3b5   :  { %v1730_v20 = vmul.f32 %v2658_v30, %v1729_v54 }
 0x3b7   :  { %1732 = vst [vmem:[#allocation14 + $0x8] sm:$0xff] %v1730_v20 }
 0x3b8   :  { %1745 = dma.vmem_to_hbm [thread:$0]  %s1738_s8, 256, %s1740_s3, [#allocation4], %s2873_s5, %s2873_s5, %s2874_s10  }
 0x3b9   :  { %2863 = dma.done.wait [#allocation4], 256  }
 0x3ba   :  { %2864 = vsyncadd [#allocation4], 4294967040 }
 0x3bb   :  { %1750 = vsyncpa [#allocation3], 1 }
 0x3bc   :  { %1751 = vsyncpa [#allocation6], 1 }
 0x3bd   :  { %1752 = vsyncpa [#allocation9], 1 }
 0x3be   :  { %1753 = vsyncpa [#allocation12], 1 }
 0x3bf   :  { %1754 = vsyncpa [#allocation4], 1 }

</bundles_post_ra>
